<compile_context>
chip_gen: v6e
topology: v6e:2x2x1
jax: 0.10.0
libtpu: 0.0.40
codegen_flags: <defaults>
</compile_context>

<pallas_src>
import jax
import jax.numpy as jnp
from jax import lax
from jax.experimental import pallas as pl
from jax.experimental.pallas import tpu as pltpu


def _round_up(x, m):
    return (x + m - 1) // m * m


# ---------------------------------------------------------------------------
# Kernel
# ---------------------------------------------------------------------------
def lstm_kernel(xw_ref, len_ref, whh_ref, w1_ref, b1_ref, w2_ref, b2_ref,
                out_ref, h_sc, c_sc):
    """One (batch_block, time_block) grid step.

    xw_ref : (T_BLK, B_BLK, 4*HP) f32   precomputed x@W_ih + b (gate bias folded in)
    len_ref: (B_BLK, 1)           i32   sequence lengths (pack_padded semantics)
    whh_ref: (HP, 4*HP)           bf16  recurrent weights (per-gate lane padded)
    w1_ref : (HP, FP)             bf16  fc1 weights
    b1_ref : (1, FP)              f32
    w2_ref : (1, FP)              f32   fc2 row (used as VPU reduction)
    b2_ref : (1, 1)               f32
    out_ref: (B_BLK, 1)           f32
    h_sc/c_sc: (B_BLK, HP)        f32   persistent hidden / cell state
    """
    t_blk = pl.program_id(1)
    T_BLK = xw_ref.shape[0]
    HP = h_sc.shape[1]

    @pl.when(t_blk == 0)
    def _init():
        h_sc[...] = jnp.zeros_like(h_sc)
        c_sc[...] = jnp.zeros_like(c_sc)

    lens = len_ref[...]                       # (B_BLK, 1) int32, constant over time

    def step(tt, carry):
        t_global = t_blk * T_BLK + tt
        h = h_sc[...]                         # (B_BLK, HP) f32
        c = c_sc[...]

        # Only the serially-dependent recurrent matmul runs per step (bf16 MXU, f32 acc).
        gates = xw_ref[tt] + jnp.dot(h.astype(jnp.bfloat16), whh_ref[...],
                                     preferred_element_type=jnp.float32)

        # Gate slices are 128-lane aligned (each gate occupies HP lanes, HP % 128 == 0).
        i_g = jax.nn.sigmoid(gates[:, 0 * HP:1 * HP])
        f_g = jax.nn.sigmoid(gates[:, 1 * HP:2 * HP])
        g_g = jnp.tanh(gates[:, 2 * HP:3 * HP])
        o_g = jax.nn.sigmoid(gates[:, 3 * HP:4 * HP])

        c_new = f_g * c + i_g * g_g
        h_new = o_g * jnp.tanh(c_new)

        # pack_padded_sequence semantics: freeze (h, c) once t >= lengths[b].
        valid = t_global < lens               # (B_BLK, 1) bool -> one VPU select each
        h_sc[...] = jnp.where(valid, h_new, h)
        c_sc[...] = jnp.where(valid, c_new, c)
        return carry

    lax.fori_loop(0, T_BLK, step, 0, unroll=True)

    @pl.when(t_blk == pl.num_programs(1) - 1)
    def _finalize():
        h = h_sc[...]                                         # final hidden == hidden[-1]
        z1 = jnp.dot(h.astype(jnp.bfloat16), w1_ref[...],
                     preferred_element_type=jnp.float32) + b1_ref[...]
        z1 = jnp.maximum(z1, 0.0)                             # ReLU
        # fc2 has N=1: a VPU multiply + lane reduction beats a degenerate MXU matmul.
        z2 = jnp.sum(z1 * w2_ref[...], axis=-1, keepdims=True) + b2_ref[...]
        out_ref[...] = jax.nn.sigmoid(z2)                     # Sigmoid


# ---------------------------------------------------------------------------
# Wrapper
# ---------------------------------------------------------------------------
def lstm_forward(text, lengths, params, *, t_blk=None, b_blk=None):
    """text: [B, T] int32 token ids; lengths: [B] int32 (>=1). Returns [B, 1] float32."""
    emb = params["embedding"]                 # [V, E] f32
    w_ih_T = params["w_ih_T"]                 # [E, 4HP] bf16
    w_hh_T = params["w_hh_T"]                 # [HP, 4HP] bf16
    b_gates = params["b_gates"]               # [1, 4HP] f32
    w1 = params["fc1_wT"]                     # [HP, FP] bf16
    b1 = params["fc1_b"]                      # [1, FP] f32
    w2 = params["fc2_row"]                    # [1, FP] f32
    b2 = params["fc2_b"]                      # [1, 1] f32

    B, T = text.shape
    E = emb.shape[1]
    HP, G = w_hh_T.shape                      # G = 4 * HP
    FP = w1.shape[1]

    if t_blk is None:
        t_blk = min(T, 16)                    # time blocking: fewer grid steps
    if b_blk is None:
        # Sublane-aligned batch block. For v7x megacore, pick b_blk ~= B/2 (mult of 8)
        # so both TensorCores get a shard of the "parallel" batch axis.
        b_blk = _round_up(B, 8)

    # --- Hoisted input projection: ONE big bf16 MXU matmul (XLA side). ---------------
    # Gather the embedding time-major directly (transpose of int32 ids is trivial),
    # so no separate transpose pass over the activations is needed.
    x_tm = jnp.take(emb, text.T, axis=0)                                    # [T, B, E]
    xw = jnp.dot(x_tm.reshape(T * B, E).astype(jnp.bfloat16), w_ih_T,
                 preferred_element_type=jnp.float32)
    xw = xw.reshape(T, B, G) + b_gates                                      # fold gate bias

    # Pad T / B to block multiples (padded rows have length 0 -> state frozen at 0).
    Tp = _round_up(T, t_blk)
    Bp = _round_up(B, b_blk)
    if Tp != T or Bp != B:
        xw = jnp.pad(xw, ((0, Tp - T), (0, Bp - B), (0, 0)))
    lens2d = lengths.astype(jnp.int32).reshape(B, 1)
    if Bp != B:
        lens2d = jnp.pad(lens2d, ((0, Bp - B), (0, 0)))

    grid = (Bp // b_blk, Tp // t_blk)

    out = pl.pallas_call(
        lstm_kernel,
        out_shape=jax.ShapeDtypeStruct((Bp, 1), jnp.float32),
        grid_spec=pltpu.PrefetchScalarGridSpec(
            num_scalar_prefetch=0,
            grid=grid,
            in_specs=[
                pl.BlockSpec((t_blk, b_blk, G), lambda b, t: (t, b, 0)),  # xW time block
                pl.BlockSpec((b_blk, 1), lambda b, t: (b, 0)),            # lengths
                pl.BlockSpec((HP, G), lambda b, t: (0, 0)),               # W_hh^T (bf16)
                pl.BlockSpec((HP, FP), lambda b, t: (0, 0)),              # fc1 W^T (bf16)
                pl.BlockSpec((1, FP), lambda b, t: (0, 0)),               # fc1 b
                pl.BlockSpec((1, FP), lambda b, t: (0, 0)),               # fc2 row
                pl.BlockSpec((1, 1), lambda b, t: (0, 0)),                # fc2 b
            ],
            out_specs=pl.BlockSpec((b_blk, 1), lambda b, t: (b, 0)),
            scratch_shapes=[
                pltpu.VMEM((b_blk, HP), jnp.float32),   # h (f32 accumulator)
                pltpu.VMEM((b_blk, HP), jnp.float32),   # c (f32 accumulator)
            ],
        ),
        # Batch axis parallel (v7x 2 TCs); time axis is a true recurrence.
        compiler_params=pltpu.CompilerParams(
            dimension_semantics=("parallel", "arbitrary")),
    )(xw, lens2d, w_hh_T, w1, b1, w2, b2)

    return out[:B]


# ---------------------------------------------------------------------------
# Parameters
# ---------------------------------------------------------------------------
def init_params(key, vocab_size, embed_dim, lstm_hidden_size, fc_hidden_size):
    """Raw parameters in PyTorch layout (float32)."""
    ks = jax.random.split(key, 8)
    scale = 0.1
    H, F, E = lstm_hidden_size, fc_hidden_size, embed_dim
    emb = scale * jax.random.normal(ks[0], (vocab_size, E), jnp.float32)
    emb = emb.at[0].set(0.0)                                 # padding_idx=0 -> zero row
    return {
        "embedding": emb,
        "w_ih": scale * jax.random.normal(ks[1], (4 * H, E), jnp.float32),
        "w_hh": scale * jax.random.normal(ks[2], (4 * H, H), jnp.float32),
        "b_ih": scale * jax.random.normal(ks[3], (4 * H,), jnp.float32),
        "b_hh": scale * jax.random.normal(ks[4], (4 * H,), jnp.float32),
        "fc1_w": scale * jax.random.normal(ks[5], (F, H), jnp.float32),
        "fc1_b": scale * jax.random.normal(ks[6], (F,), jnp.float32),
        "fc2_w": scale * jax.random.normal(ks[7], (1, F), jnp.float32),
        "fc2_b": jnp.zeros((1,), jnp.float32),
    }


def prepare_kernel_params(raw):
    """Transpose, per-gate lane-pad (H -> HP = round_up(H,128)) and bf16-cast weights."""
    H = raw["w_hh"].shape[1]
    F = raw["fc1_w"].shape[0]
    HP = _round_up(H, 128)      # each gate gets its own 128-lane-aligned block
    FP = _round_up(F, 128)
    G = 4 * HP

    def pad_gate_cols(w_t):     # [R, 4H] -> [R, 4HP]; gate k -> cols [k*HP, k*HP+H)
        R = w_t.shape[0]
        out = jnp.zeros((R, G), jnp.float32)
        for k in range(4):
            out = out.at[:, k * HP:k * HP + H].set(w_t[:, k * H:(k + 1) * H])
        return out

    w_ih_T = pad_gate_cols(raw["w_ih"].T)                                     # [E, 4HP]
    w_hh_T = jnp.zeros((HP, G), jnp.float32).at[:H].set(pad_gate_cols(raw["w_hh"].T))
    b_gate = pad_gate_cols((raw["b_ih"] + raw["b_hh"])[None, :])              # [1, 4HP]
    fc1_wT = jnp.zeros((HP, FP), jnp.float32).at[:H, :F].set(raw["fc1_w"].T)
    fc1_b = jnp.zeros((1, FP), jnp.float32).at[:, :F].set(raw["fc1_b"][None, :])
    fc2_row = jnp.zeros((1, FP), jnp.float32).at[:, :F].set(raw["fc2_w"])
    fc2_b = raw["fc2_b"].reshape(1, 1)

    return {
        "embedding": raw["embedding"],              # f32 [V, E]
        "w_ih_T": w_ih_T.astype(jnp.bfloat16),      # [E, 4HP]  (hoisted projection)
        "w_hh_T": w_hh_T.astype(jnp.bfloat16),      # [HP, 4HP] (in-kernel recurrence)
        "b_gates": b_gate,                          # [1, 4HP] f32 (folded into xW)
        "fc1_wT": fc1_wT.astype(jnp.bfloat16),      # [HP, FP]
        "fc1_b": fc1_b,                             # [1, FP] f32
        "fc2_row": fc2_row,                         # [1, FP] f32
        "fc2_b": fc2_b,                             # [1, 1] f32
    }


# ---------------------------------------------------------------------------
# Pure-JAX reference (f32) for a correctness check
# ---------------------------------------------------------------------------
def lstm_ref(text, lengths, raw):
    emb, w_ih, w_hh = raw["embedding"], raw["w_ih"], raw["w_hh"]
    b = raw["b_ih"] + raw["b_hh"]
    B, T = text.shape
    H = w_hh.shape[1]
    x = jnp.take(emb, text, axis=0)                          # [B, T, E]
    h = jnp.zeros((B, H), jnp.float32)
    c = jnp.zeros((B, H), jnp.float32)
    for t in range(T):
        g = x[:, t] @ w_ih.T + h @ w_hh.T + b
        i = jax.nn.sigmoid(g[:, 0 * H:1 * H])
        f = jax.nn.sigmoid(g[:, 1 * H:2 * H])
        gg = jnp.tanh(g[:, 2 * H:3 * H])
        o = jax.nn.sigmoid(g[:, 3 * H:4 * H])
        c_new = f * c + i * gg
        h_new = o * jnp.tanh(c_new)
        m = (t < lengths)[:, None]
        h = jnp.where(m, h_new, h)
        c = jnp.where(m, c_new, c)
    z1 = jnp.maximum(h @ raw["fc1_w"].T + raw["fc1_b"], 0.0)
    return jax.nn.sigmoid(z1 @ raw["fc2_w"].T + raw["fc2_b"])


if __name__ == "__main__":
    vocab_size, embed_dim, lstm_hidden, fc_hidden = 20, 16, 32, 32
    B, T = 2, 8

    key = jax.random.PRNGKey(0)
    kp, kt = jax.random.split(key)
    raw = init_params(kp, vocab_size, embed_dim, lstm_hidden, fc_hidden)
    params = prepare_kernel_params(raw)

    # Deterministic example inputs: padded token ids + per-sequence lengths (>= 1).
    lengths = jnp.array([8, 5], dtype=jnp.int32)
    text = jax.random.randint(kt, (B, T), 1, vocab_size, dtype=jnp.int32)
    pad_mask = jnp.arange(T, dtype=jnp.int32)[None, :] < lengths[:, None]
    text = jnp.where(pad_mask, text, 0)                      # pad with token 0

    out = lstm_forward(text, lengths, params)
    jax.block_until_ready(out)

    assert out.shape == (B, 1) and out.dtype == jnp.float32
    ref = lstm_ref(text, lengths, raw)
    assert jnp.max(jnp.abs(out - ref)) < 5e-2, (out, ref)    # bf16-matmul tolerance
    print("KERNEL_OK")
</pallas_src>

<mosaic_0001>
module attributes {stable_mosaic.version = 11 : i64} {
  func.func @lstm_kernel(%arg0: i32, %arg1: i32, %arg2: memref<8x8x512xf32, #tpu.memory_space<vmem>>, %arg3: memref<8x1xi32, #tpu.memory_space<vmem>>, %arg4: memref<128x512xbf16, #tpu.memory_space<vmem>>, %arg5: memref<128x128xbf16, #tpu.memory_space<vmem>>, %arg6: memref<1x128xf32, #tpu.memory_space<vmem>>, %arg7: memref<1x128xf32, #tpu.memory_space<vmem>>, %arg8: memref<1x1xf32, #tpu.memory_space<vmem>>, %arg9: memref<8x1xf32, #tpu.memory_space<vmem>>, %arg10: memref<8x128xf32, #tpu.memory_space<vmem>>, %arg11: memref<8x128xf32, #tpu.memory_space<vmem>>) attributes {dimension_semantics = [#tpu.dimension_semantics<parallel>, #tpu.dimension_semantics<arbitrary>], iteration_bounds = array<i64: 1, 1>, scalar_prefetch = 0 : i64, scratch_operands = 2 : i64, tpu.core_type = #tpu.core_type<tc>, window_params = [{transform_indices = @transform_0, window_bounds = array<i64: 8, 8, 512>}, {transform_indices = @transform_1, window_bounds = array<i64: 8, 1>}, {pipeline_mode = #tpu.pipeline_mode<synchronous>, transform_indices = @transform_2, window_bounds = array<i64: 128, 512>}, {pipeline_mode = #tpu.pipeline_mode<synchronous>, transform_indices = @transform_3, window_bounds = array<i64: 128, 128>}, {pipeline_mode = #tpu.pipeline_mode<synchronous>, transform_indices = @transform_4, window_bounds = array<i64: 1, 128>}, {pipeline_mode = #tpu.pipeline_mode<synchronous>, transform_indices = @transform_5, window_bounds = array<i64: 1, 128>}, {pipeline_mode = #tpu.pipeline_mode<synchronous>, transform_indices = @transform_6, window_bounds = array<i64: 1, 1>}, {transform_indices = @transform_7, window_bounds = array<i64: 8, 1>}]} {
    %c0_i32 = arith.constant 0 : i32
    %0 = arith.cmpi eq, %arg1, %c0_i32 : i32
    %1 = arith.extui %0 : i1 to i32
    %c0_i32_0 = arith.constant 0 : i32
    %2 = arith.cmpi ne, %1, %c0_i32_0 : i32
    scf.if %2 {
      %cst_140 = arith.constant 0.000000e+00 : f32
      %375 = vector.broadcast %cst_140 : f32 to vector<8x128xf32>
      %c0_141 = arith.constant 0 : index
      %c0_142 = arith.constant 0 : index
      %376 = vector.load %arg10[%c0_141, %c0_142] : memref<8x128xf32, #tpu.memory_space<vmem>>, vector<8x128xf32>
      tpu.vector_store %arg10[%c0_141, %c0_142], %375 {strides = array<i32>} : memref<8x128xf32, #tpu.memory_space<vmem>>, vector<8x128xf32>,
      %cst_143 = arith.constant 0.000000e+00 : f32
      %377 = vector.broadcast %cst_143 : f32 to vector<8x128xf32>
      %c0_144 = arith.constant 0 : index
      %c0_145 = arith.constant 0 : index
      %378 = vector.load %arg11[%c0_144, %c0_145] : memref<8x128xf32, #tpu.memory_space<vmem>>, vector<8x128xf32>
      tpu.vector_store %arg11[%c0_144, %c0_145], %377 {strides = array<i32>} : memref<8x128xf32, #tpu.memory_space<vmem>>, vector<8x128xf32>,
    } else {
    }
    %c0 = arith.constant 0 : index
    %c0_1 = arith.constant 0 : index
    %3 = vector.load %arg3[%c0, %c0_1] : memref<8x1xi32, #tpu.memory_space<vmem>>, vector<8x1xi32>
    %c0_i32_2 = arith.constant 0 : i32
    %c8_i32 = arith.constant 8 : i32
    %4 = arith.muli %arg1, %c8_i32 : i32
    %5 = arith.addi %4, %c0_i32_2 : i32
    %c0_3 = arith.constant 0 : index
    %c0_4 = arith.constant 0 : index
    %6 = vector.load %arg10[%c0_3, %c0_4] : memref<8x128xf32, #tpu.memory_space<vmem>>, vector<8x128xf32>
    %c0_5 = arith.constant 0 : index
    %c0_6 = arith.constant 0 : index
    %7 = vector.load %arg11[%c0_5, %c0_6] : memref<8x128xf32, #tpu.memory_space<vmem>>, vector<8x128xf32>
    %8 = arith.index_cast %c0_i32_2 : i32 to index
    %c0_7 = arith.constant 0 : index
    %c0_8 = arith.constant 0 : index
    %9 = vector.load %arg2[%8, %c0_7, %c0_8] : memref<8x8x512xf32, #tpu.memory_space<vmem>>, vector<1x8x512xf32>
    %10 = vector.shape_cast %9 : vector<1x8x512xf32> to vector<8x512xf32>
    %11 = arith.truncf %6 : vector<8x128xf32> to vector<8x128xbf16>
    %c0_9 = arith.constant 0 : index
    %c0_10 = arith.constant 0 : index
    %12 = vector.load %arg4[%c0_9, %c0_10] : memref<128x512xbf16, #tpu.memory_space<vmem>>, vector<128x512xbf16>
    %cst = arith.constant dense<0.000000e+00> : vector<8x512xf32>
    %13 = tpu.matmul %11, %12, %cst {dimension_numbers = #tpu.dot_dimension_numbers<[1], [0], [0], [1], [0, 0, 1, 1], [], []>} : vector<8x128xbf16>, vector<128x512xbf16>, vector<8x512xf32> -> vector<8x512xf32>
    %14 = arith.addf %10, %13 : vector<8x512xf32>
    %15 = vector.extract_strided_slice %14 {offsets = [0, 0], sizes = [8, 128], strides = [1, 1]} : vector<8x512xf32> to vector<8x128xf32>
    %16 = arith.negf %15 : vector<8x128xf32>
    %17 = math.exp %16 : vector<8x128xf32>
    %cst_11 = arith.constant 1.000000e+00 : f32
    %18 = vector.broadcast %cst_11 : f32 to vector<8x128xf32>
    %19 = arith.addf %18, %17 : vector<8x128xf32>
    %20 = arith.divf %18, %19 : vector<8x128xf32>
    %21 = vector.extract_strided_slice %14 {offsets = [0, 128], sizes = [8, 128], strides = [1, 1]} : vector<8x512xf32> to vector<8x128xf32>
    %22 = arith.negf %21 : vector<8x128xf32>
    %23 = math.exp %22 : vector<8x128xf32>
    %cst_12 = arith.constant 1.000000e+00 : f32
    %24 = vector.broadcast %cst_12 : f32 to vector<8x128xf32>
    %25 = arith.addf %24, %23 : vector<8x128xf32>
    %26 = arith.divf %24, %25 : vector<8x128xf32>
    %27 = vector.extract_strided_slice %14 {offsets = [0, 256], sizes = [8, 128], strides = [1, 1]} : vector<8x512xf32> to vector<8x128xf32>
    %28 = math.tanh %27 : vector<8x128xf32>
    %29 = vector.extract_strided_slice %14 {offsets = [0, 384], sizes = [8, 128], strides = [1, 1]} : vector<8x512xf32> to vector<8x128xf32>
    %30 = arith.negf %29 : vector<8x128xf32>
    %31 = math.exp %30 : vector<8x128xf32>
    %cst_13 = arith.constant 1.000000e+00 : f32
    %32 = vector.broadcast %cst_13 : f32 to vector<8x128xf32>
    %33 = arith.addf %32, %31 : vector<8x128xf32>
    %34 = arith.divf %32, %33 : vector<8x128xf32>
    %35 = arith.mulf %26, %7 : vector<8x128xf32>
    %36 = arith.mulf %20, %28 : vector<8x128xf32>
    %37 = arith.addf %35, %36 : vector<8x128xf32>
    %38 = math.tanh %37 : vector<8x128xf32>
    %39 = arith.mulf %34, %38 : vector<8x128xf32>
    %40 = vector.broadcast %5 : i32 to vector<8x1xi32>
    %41 = arith.cmpi slt, %40, %3 : vector<8x1xi32>
    %42 = vector.shape_cast %41 : vector<8x1xi1> to vector<8x1xi1>
    %43 = vector.broadcast %42 : vector<8x1xi1> to vector<8x128xi1>
    %44 = arith.select %43, %39, %6 : vector<8x128xi1>, vector<8x128xf32>
    %c0_14 = arith.constant 0 : index
    %c0_15 = arith.constant 0 : index
    %45 = vector.load %arg10[%c0_14, %c0_15] : memref<8x128xf32, #tpu.memory_space<vmem>>, vector<8x128xf32>
    tpu.vector_store %arg10[%c0_14, %c0_15], %44 {strides = array<i32>} : memref<8x128xf32, #tpu.memory_space<vmem>>, vector<8x128xf32>,
    %46 = vector.shape_cast %41 : vector<8x1xi1> to vector<8x1xi1>
    %47 = vector.broadcast %46 : vector<8x1xi1> to vector<8x128xi1>
    %48 = arith.select %47, %37, %7 : vector<8x128xi1>, vector<8x128xf32>
    %c0_16 = arith.constant 0 : index
    %c0_17 = arith.constant 0 : index
    %49 = vector.load %arg11[%c0_16, %c0_17] : memref<8x128xf32, #tpu.memory_space<vmem>>, vector<8x128xf32>
    tpu.vector_store %arg11[%c0_16, %c0_17], %48 {strides = array<i32>} : memref<8x128xf32, #tpu.memory_space<vmem>>, vector<8x128xf32>,
    %c1_i32 = arith.constant 1 : i32
    %c8_i32_18 = arith.constant 8 : i32
    %50 = arith.muli %arg1, %c8_i32_18 : i32
    %51 = arith.addi %50, %c1_i32 : i32
    %c0_19 = arith.constant 0 : index
    %c0_20 = arith.constant 0 : index
    %52 = vector.load %arg10[%c0_19, %c0_20] : memref<8x128xf32, #tpu.memory_space<vmem>>, vector<8x128xf32>
    %c0_21 = arith.constant 0 : index
    %c0_22 = arith.constant 0 : index
    %53 = vector.load %arg11[%c0_21, %c0_22] : memref<8x128xf32, #tpu.memory_space<vmem>>, vector<8x128xf32>
    %54 = arith.index_cast %c1_i32 : i32 to index
    %c0_23 = arith.constant 0 : index
    %c0_24 = arith.constant 0 : index
    %55 = vector.load %arg2[%54, %c0_23, %c0_24] : memref<8x8x512xf32, #tpu.memory_space<vmem>>, vector<1x8x512xf32>
    %56 = vector.shape_cast %55 : vector<1x8x512xf32> to vector<8x512xf32>
    %57 = arith.truncf %52 : vector<8x128xf32> to vector<8x128xbf16>
    %c0_25 = arith.constant 0 : index
    %c0_26 = arith.constant 0 : index
    %58 = vector.load %arg4[%c0_25, %c0_26] : memref<128x512xbf16, #tpu.memory_space<vmem>>, vector<128x512xbf16>
    %cst_27 = arith.constant dense<0.000000e+00> : vector<8x512xf32>
    %59 = tpu.matmul %57, %58, %cst_27 {dimension_numbers = #tpu.dot_dimension_numbers<[1], [0], [0], [1], [0, 0, 1, 1], [], []>} : vector<8x128xbf16>, vector<128x512xbf16>, vector<8x512xf32> -> vector<8x512xf32>
    %60 = arith.addf %56, %59 : vector<8x512xf32>
    %61 = vector.extract_strided_slice %60 {offsets = [0, 0], sizes = [8, 128], strides = [1, 1]} : vector<8x512xf32> to vector<8x128xf32>
    %62 = arith.negf %61 : vector<8x128xf32>
    %63 = math.exp %62 : vector<8x128xf32>
    %cst_28 = arith.constant 1.000000e+00 : f32
    %64 = vector.broadcast %cst_28 : f32 to vector<8x128xf32>
    %65 = arith.addf %64, %63 : vector<8x128xf32>
    %66 = arith.divf %64, %65 : vector<8x128xf32>
    %67 = vector.extract_strided_slice %60 {offsets = [0, 128], sizes = [8, 128], strides = [1, 1]} : vector<8x512xf32> to vector<8x128xf32>
    %68 = arith.negf %67 : vector<8x128xf32>
    %69 = math.exp %68 : vector<8x128xf32>
    %cst_29 = arith.constant 1.000000e+00 : f32
    %70 = vector.broadcast %cst_29 : f32 to vector<8x128xf32>
    %71 = arith.addf %70, %69 : vector<8x128xf32>
    %72 = arith.divf %70, %71 : vector<8x128xf32>
    %73 = vector.extract_strided_slice %60 {offsets = [0, 256], sizes = [8, 128], strides = [1, 1]} : vector<8x512xf32> to vector<8x128xf32>
    %74 = math.tanh %73 : vector<8x128xf32>
    %75 = vector.extract_strided_slice %60 {offsets = [0, 384], sizes = [8, 128], strides = [1, 1]} : vector<8x512xf32> to vector<8x128xf32>
    %76 = arith.negf %75 : vector<8x128xf32>
    %77 = math.exp %76 : vector<8x128xf32>
    %cst_30 = arith.constant 1.000000e+00 : f32
    %78 = vector.broadcast %cst_30 : f32 to vector<8x128xf32>
    %79 = arith.addf %78, %77 : vector<8x128xf32>
    %80 = arith.divf %78, %79 : vector<8x128xf32>
    %81 = arith.mulf %72, %53 : vector<8x128xf32>
    %82 = arith.mulf %66, %74 : vector<8x128xf32>
    %83 = arith.addf %81, %82 : vector<8x128xf32>
    %84 = math.tanh %83 : vector<8x128xf32>
    %85 = arith.mulf %80, %84 : vector<8x128xf32>
    %86 = vector.broadcast %51 : i32 to vector<8x1xi32>
    %87 = arith.cmpi slt, %86, %3 : vector<8x1xi32>
    %88 = vector.shape_cast %87 : vector<8x1xi1> to vector<8x1xi1>
    %89 = vector.broadcast %88 : vector<8x1xi1> to vector<8x128xi1>
    %90 = arith.select %89, %85, %52 : vector<8x128xi1>, vector<8x128xf32>
    %c0_31 = arith.constant 0 : index
    %c0_32 = arith.constant 0 : index
    %91 = vector.load %arg10[%c0_31, %c0_32] : memref<8x128xf32, #tpu.memory_space<vmem>>, vector<8x128xf32>
    tpu.vector_store %arg10[%c0_31, %c0_32], %90 {strides = array<i32>} : memref<8x128xf32, #tpu.memory_space<vmem>>, vector<8x128xf32>,
    %92 = vector.shape_cast %87 : vector<8x1xi1> to vector<8x1xi1>
    %93 = vector.broadcast %92 : vector<8x1xi1> to vector<8x128xi1>
    %94 = arith.select %93, %83, %53 : vector<8x128xi1>, vector<8x128xf32>
    %c0_33 = arith.constant 0 : index
    %c0_34 = arith.constant 0 : index
    %95 = vector.load %arg11[%c0_33, %c0_34] : memref<8x128xf32, #tpu.memory_space<vmem>>, vector<8x128xf32>
    tpu.vector_store %arg11[%c0_33, %c0_34], %94 {strides = array<i32>} : memref<8x128xf32, #tpu.memory_space<vmem>>, vector<8x128xf32>,
    %c2_i32 = arith.constant 2 : i32
    %c8_i32_35 = arith.constant 8 : i32
    %96 = arith.muli %arg1, %c8_i32_35 : i32
    %97 = arith.addi %96, %c2_i32 : i32
    %c0_36 = arith.constant 0 : index
    %c0_37 = arith.constant 0 : index
    %98 = vector.load %arg10[%c0_36, %c0_37] : memref<8x128xf32, #tpu.memory_space<vmem>>, vector<8x128xf32>
    %c0_38 = arith.constant 0 : index
    %c0_39 = arith.constant 0 : index
    %99 = vector.load %arg11[%c0_38, %c0_39] : memref<8x128xf32, #tpu.memory_space<vmem>>, vector<8x128xf32>
    %100 = arith.index_cast %c2_i32 : i32 to index
    %c0_40 = arith.constant 0 : index
    %c0_41 = arith.constant 0 : index
    %101 = vector.load %arg2[%100, %c0_40, %c0_41] : memref<8x8x512xf32, #tpu.memory_space<vmem>>, vector<1x8x512xf32>
    %102 = vector.shape_cast %101 : vector<1x8x512xf32> to vector<8x512xf32>
    %103 = arith.truncf %98 : vector<8x128xf32> to vector<8x128xbf16>
    %c0_42 = arith.constant 0 : index
    %c0_43 = arith.constant 0 : index
    %104 = vector.load %arg4[%c0_42, %c0_43] : memref<128x512xbf16, #tpu.memory_space<vmem>>, vector<128x512xbf16>
    %cst_44 = arith.constant dense<0.000000e+00> : vector<8x512xf32>
    %105 = tpu.matmul %103, %104, %cst_44 {dimension_numbers = #tpu.dot_dimension_numbers<[1], [0], [0], [1], [0, 0, 1, 1], [], []>} : vector<8x128xbf16>, vector<128x512xbf16>, vector<8x512xf32> -> vector<8x512xf32>
    %106 = arith.addf %102, %105 : vector<8x512xf32>
    %107 = vector.extract_strided_slice %106 {offsets = [0, 0], sizes = [8, 128], strides = [1, 1]} : vector<8x512xf32> to vector<8x128xf32>
    %108 = arith.negf %107 : vector<8x128xf32>
    %109 = math.exp %108 : vector<8x128xf32>
    %cst_45 = arith.constant 1.000000e+00 : f32
    %110 = vector.broadcast %cst_45 : f32 to vector<8x128xf32>
    %111 = arith.addf %110, %109 : vector<8x128xf32>
    %112 = arith.divf %110, %111 : vector<8x128xf32>
    %113 = vector.extract_strided_slice %106 {offsets = [0, 128], sizes = [8, 128], strides = [1, 1]} : vector<8x512xf32> to vector<8x128xf32>
    %114 = arith.negf %113 : vector<8x128xf32>
    %115 = math.exp %114 : vector<8x128xf32>
    %cst_46 = arith.constant 1.000000e+00 : f32
    %116 = vector.broadcast %cst_46 : f32 to vector<8x128xf32>
    %117 = arith.addf %116, %115 : vector<8x128xf32>
    %118 = arith.divf %116, %117 : vector<8x128xf32>
    %119 = vector.extract_strided_slice %106 {offsets = [0, 256], sizes = [8, 128], strides = [1, 1]} : vector<8x512xf32> to vector<8x128xf32>
    %120 = math.tanh %119 : vector<8x128xf32>
    %121 = vector.extract_strided_slice %106 {offsets = [0, 384], sizes = [8, 128], strides = [1, 1]} : vector<8x512xf32> to vector<8x128xf32>
    %122 = arith.negf %121 : vector<8x128xf32>
    %123 = math.exp %122 : vector<8x128xf32>
    %cst_47 = arith.constant 1.000000e+00 : f32
    %124 = vector.broadcast %cst_47 : f32 to vector<8x128xf32>
    %125 = arith.addf %124, %123 : vector<8x128xf32>
    %126 = arith.divf %124, %125 : vector<8x128xf32>
    %127 = arith.mulf %118, %99 : vector<8x128xf32>
    %128 = arith.mulf %112, %120 : vector<8x128xf32>
    %129 = arith.addf %127, %128 : vector<8x128xf32>
    %130 = math.tanh %129 : vector<8x128xf32>
    %131 = arith.mulf %126, %130 : vector<8x128xf32>
    %132 = vector.broadcast %97 : i32 to vector<8x1xi32>
    %133 = arith.cmpi slt, %132, %3 : vector<8x1xi32>
    %134 = vector.shape_cast %133 : vector<8x1xi1> to vector<8x1xi1>
    %135 = vector.broadcast %134 : vector<8x1xi1> to vector<8x128xi1>
    %136 = arith.select %135, %131, %98 : vector<8x128xi1>, vector<8x128xf32>
    %c0_48 = arith.constant 0 : index
    %c0_49 = arith.constant 0 : index
    %137 = vector.load %arg10[%c0_48, %c0_49] : memref<8x128xf32, #tpu.memory_space<vmem>>, vector<8x128xf32>
    tpu.vector_store %arg10[%c0_48, %c0_49], %136 {strides = array<i32>} : memref<8x128xf32, #tpu.memory_space<vmem>>, vector<8x128xf32>,
    %138 = vector.shape_cast %133 : vector<8x1xi1> to vector<8x1xi1>
    %139 = vector.broadcast %138 : vector<8x1xi1> to vector<8x128xi1>
    %140 = arith.select %139, %129, %99 : vector<8x128xi1>, vector<8x128xf32>
    %c0_50 = arith.constant 0 : index
    %c0_51 = arith.constant 0 : index
    %141 = vector.load %arg11[%c0_50, %c0_51] : memref<8x128xf32, #tpu.memory_space<vmem>>, vector<8x128xf32>
    tpu.vector_store %arg11[%c0_50, %c0_51], %140 {strides = array<i32>} : memref<8x128xf32, #tpu.memory_space<vmem>>, vector<8x128xf32>,
    %c3_i32 = arith.constant 3 : i32
    %c8_i32_52 = arith.constant 8 : i32
    %142 = arith.muli %arg1, %c8_i32_52 : i32
    %143 = arith.addi %142, %c3_i32 : i32
    %c0_53 = arith.constant 0 : index
    %c0_54 = arith.constant 0 : index
    %144 = vector.load %arg10[%c0_53, %c0_54] : memref<8x128xf32, #tpu.memory_space<vmem>>, vector<8x128xf32>
    %c0_55 = arith.constant 0 : index
    %c0_56 = arith.constant 0 : index
    %145 = vector.load %arg11[%c0_55, %c0_56] : memref<8x128xf32, #tpu.memory_space<vmem>>, vector<8x128xf32>
    %146 = arith.index_cast %c3_i32 : i32 to index
    %c0_57 = arith.constant 0 : index
    %c0_58 = arith.constant 0 : index
    %147 = vector.load %arg2[%146, %c0_57, %c0_58] : memref<8x8x512xf32, #tpu.memory_space<vmem>>, vector<1x8x512xf32>
    %148 = vector.shape_cast %147 : vector<1x8x512xf32> to vector<8x512xf32>
    %149 = arith.truncf %144 : vector<8x128xf32> to vector<8x128xbf16>
    %c0_59 = arith.constant 0 : index
    %c0_60 = arith.constant 0 : index
    %150 = vector.load %arg4[%c0_59, %c0_60] : memref<128x512xbf16, #tpu.memory_space<vmem>>, vector<128x512xbf16>
    %cst_61 = arith.constant dense<0.000000e+00> : vector<8x512xf32>
    %151 = tpu.matmul %149, %150, %cst_61 {dimension_numbers = #tpu.dot_dimension_numbers<[1], [0], [0], [1], [0, 0, 1, 1], [], []>} : vector<8x128xbf16>, vector<128x512xbf16>, vector<8x512xf32> -> vector<8x512xf32>
    %152 = arith.addf %148, %151 : vector<8x512xf32>
    %153 = vector.extract_strided_slice %152 {offsets = [0, 0], sizes = [8, 128], strides = [1, 1]} : vector<8x512xf32> to vector<8x128xf32>
    %154 = arith.negf %153 : vector<8x128xf32>
    %155 = math.exp %154 : vector<8x128xf32>
    %cst_62 = arith.constant 1.000000e+00 : f32
    %156 = vector.broadcast %cst_62 : f32 to vector<8x128xf32>
    %157 = arith.addf %156, %155 : vector<8x128xf32>
    %158 = arith.divf %156, %157 : vector<8x128xf32>
    %159 = vector.extract_strided_slice %152 {offsets = [0, 128], sizes = [8, 128], strides = [1, 1]} : vector<8x512xf32> to vector<8x128xf32>
    %160 = arith.negf %159 : vector<8x128xf32>
    %161 = math.exp %160 : vector<8x128xf32>
    %cst_63 = arith.constant 1.000000e+00 : f32
    %162 = vector.broadcast %cst_63 : f32 to vector<8x128xf32>
    %163 = arith.addf %162, %161 : vector<8x128xf32>
    %164 = arith.divf %162, %163 : vector<8x128xf32>
    %165 = vector.extract_strided_slice %152 {offsets = [0, 256], sizes = [8, 128], strides = [1, 1]} : vector<8x512xf32> to vector<8x128xf32>
    %166 = math.tanh %165 : vector<8x128xf32>
    %167 = vector.extract_strided_slice %152 {offsets = [0, 384], sizes = [8, 128], strides = [1, 1]} : vector<8x512xf32> to vector<8x128xf32>
    %168 = arith.negf %167 : vector<8x128xf32>
    %169 = math.exp %168 : vector<8x128xf32>
    %cst_64 = arith.constant 1.000000e+00 : f32
    %170 = vector.broadcast %cst_64 : f32 to vector<8x128xf32>
    %171 = arith.addf %170, %169 : vector<8x128xf32>
    %172 = arith.divf %170, %171 : vector<8x128xf32>
    %173 = arith.mulf %164, %145 : vector<8x128xf32>
    %174 = arith.mulf %158, %166 : vector<8x128xf32>
    %175 = arith.addf %173, %174 : vector<8x128xf32>
    %176 = math.tanh %175 : vector<8x128xf32>
    %177 = arith.mulf %172, %176 : vector<8x128xf32>
    %178 = vector.broadcast %143 : i32 to vector<8x1xi32>
    %179 = arith.cmpi slt, %178, %3 : vector<8x1xi32>
    %180 = vector.shape_cast %179 : vector<8x1xi1> to vector<8x1xi1>
    %181 = vector.broadcast %180 : vector<8x1xi1> to vector<8x128xi1>
    %182 = arith.select %181, %177, %144 : vector<8x128xi1>, vector<8x128xf32>
    %c0_65 = arith.constant 0 : index
    %c0_66 = arith.constant 0 : index
    %183 = vector.load %arg10[%c0_65, %c0_66] : memref<8x128xf32, #tpu.memory_space<vmem>>, vector<8x128xf32>
    tpu.vector_store %arg10[%c0_65, %c0_66], %182 {strides = array<i32>} : memref<8x128xf32, #tpu.memory_space<vmem>>, vector<8x128xf32>,
    %184 = vector.shape_cast %179 : vector<8x1xi1> to vector<8x1xi1>
    %185 = vector.broadcast %184 : vector<8x1xi1> to vector<8x128xi1>
    %186 = arith.select %185, %175, %145 : vector<8x128xi1>, vector<8x128xf32>
    %c0_67 = arith.constant 0 : index
    %c0_68 = arith.constant 0 : index
    %187 = vector.load %arg11[%c0_67, %c0_68] : memref<8x128xf32, #tpu.memory_space<vmem>>, vector<8x128xf32>
    tpu.vector_store %arg11[%c0_67, %c0_68], %186 {strides = array<i32>} : memref<8x128xf32, #tpu.memory_space<vmem>>, vector<8x128xf32>,
    %c4_i32 = arith.constant 4 : i32
    %c8_i32_69 = arith.constant 8 : i32
    %188 = arith.muli %arg1, %c8_i32_69 : i32
    %189 = arith.addi %188, %c4_i32 : i32
    %c0_70 = arith.constant 0 : index
    %c0_71 = arith.constant 0 : index
    %190 = vector.load %arg10[%c0_70, %c0_71] : memref<8x128xf32, #tpu.memory_space<vmem>>, vector<8x128xf32>
    %c0_72 = arith.constant 0 : index
    %c0_73 = arith.constant 0 : index
    %191 = vector.load %arg11[%c0_72, %c0_73] : memref<8x128xf32, #tpu.memory_space<vmem>>, vector<8x128xf32>
    %192 = arith.index_cast %c4_i32 : i32 to index
    %c0_74 = arith.constant 0 : index
    %c0_75 = arith.constant 0 : index
    %193 = vector.load %arg2[%192, %c0_74, %c0_75] : memref<8x8x512xf32, #tpu.memory_space<vmem>>, vector<1x8x512xf32>
    %194 = vector.shape_cast %193 : vector<1x8x512xf32> to vector<8x512xf32>
    %195 = arith.truncf %190 : vector<8x128xf32> to vector<8x128xbf16>
    %c0_76 = arith.constant 0 : index
    %c0_77 = arith.constant 0 : index
    %196 = vector.load %arg4[%c0_76, %c0_77] : memref<128x512xbf16, #tpu.memory_space<vmem>>, vector<128x512xbf16>
    %cst_78 = arith.constant dense<0.000000e+00> : vector<8x512xf32>
    %197 = tpu.matmul %195, %196, %cst_78 {dimension_numbers = #tpu.dot_dimension_numbers<[1], [0], [0], [1], [0, 0, 1, 1], [], []>} : vector<8x128xbf16>, vector<128x512xbf16>, vector<8x512xf32> -> vector<8x512xf32>
    %198 = arith.addf %194, %197 : vector<8x512xf32>
    %199 = vector.extract_strided_slice %198 {offsets = [0, 0], sizes = [8, 128], strides = [1, 1]} : vector<8x512xf32> to vector<8x128xf32>
    %200 = arith.negf %199 : vector<8x128xf32>
    %201 = math.exp %200 : vector<8x128xf32>
    %cst_79 = arith.constant 1.000000e+00 : f32
    %202 = vector.broadcast %cst_79 : f32 to vector<8x128xf32>
    %203 = arith.addf %202, %201 : vector<8x128xf32>
    %204 = arith.divf %202, %203 : vector<8x128xf32>
    %205 = vector.extract_strided_slice %198 {offsets = [0, 128], sizes = [8, 128], strides = [1, 1]} : vector<8x512xf32> to vector<8x128xf32>
    %206 = arith.negf %205 : vector<8x128xf32>
    %207 = math.exp %206 : vector<8x128xf32>
    %cst_80 = arith.constant 1.000000e+00 : f32
    %208 = vector.broadcast %cst_80 : f32 to vector<8x128xf32>
    %209 = arith.addf %208, %207 : vector<8x128xf32>
    %210 = arith.divf %208, %209 : vector<8x128xf32>
    %211 = vector.extract_strided_slice %198 {offsets = [0, 256], sizes = [8, 128], strides = [1, 1]} : vector<8x512xf32> to vector<8x128xf32>
    %212 = math.tanh %211 : vector<8x128xf32>
    %213 = vector.extract_strided_slice %198 {offsets = [0, 384], sizes = [8, 128], strides = [1, 1]} : vector<8x512xf32> to vector<8x128xf32>
    %214 = arith.negf %213 : vector<8x128xf32>
    %215 = math.exp %214 : vector<8x128xf32>
    %cst_81 = arith.constant 1.000000e+00 : f32
    %216 = vector.broadcast %cst_81 : f32 to vector<8x128xf32>
    %217 = arith.addf %216, %215 : vector<8x128xf32>
    %218 = arith.divf %216, %217 : vector<8x128xf32>
    %219 = arith.mulf %210, %191 : vector<8x128xf32>
    %220 = arith.mulf %204, %212 : vector<8x128xf32>
    %221 = arith.addf %219, %220 : vector<8x128xf32>
    %222 = math.tanh %221 : vector<8x128xf32>
    %223 = arith.mulf %218, %222 : vector<8x128xf32>
    %224 = vector.broadcast %189 : i32 to vector<8x1xi32>
    %225 = arith.cmpi slt, %224, %3 : vector<8x1xi32>
    %226 = vector.shape_cast %225 : vector<8x1xi1> to vector<8x1xi1>
    %227 = vector.broadcast %226 : vector<8x1xi1> to vector<8x128xi1>
    %228 = arith.select %227, %223, %190 : vector<8x128xi1>, vector<8x128xf32>
    %c0_82 = arith.constant 0 : index
    %c0_83 = arith.constant 0 : index
    %229 = vector.load %arg10[%c0_82, %c0_83] : memref<8x128xf32, #tpu.memory_space<vmem>>, vector<8x128xf32>
    tpu.vector_store %arg10[%c0_82, %c0_83], %228 {strides = array<i32>} : memref<8x128xf32, #tpu.memory_space<vmem>>, vector<8x128xf32>,
    %230 = vector.shape_cast %225 : vector<8x1xi1> to vector<8x1xi1>
    %231 = vector.broadcast %230 : vector<8x1xi1> to vector<8x128xi1>
    %232 = arith.select %231, %221, %191 : vector<8x128xi1>, vector<8x128xf32>
    %c0_84 = arith.constant 0 : index
    %c0_85 = arith.constant 0 : index
    %233 = vector.load %arg11[%c0_84, %c0_85] : memref<8x128xf32, #tpu.memory_space<vmem>>, vector<8x128xf32>
    tpu.vector_store %arg11[%c0_84, %c0_85], %232 {strides = array<i32>} : memref<8x128xf32, #tpu.memory_space<vmem>>, vector<8x128xf32>,
    %c5_i32 = arith.constant 5 : i32
    %c8_i32_86 = arith.constant 8 : i32
    %234 = arith.muli %arg1, %c8_i32_86 : i32
    %235 = arith.addi %234, %c5_i32 : i32
    %c0_87 = arith.constant 0 : index
    %c0_88 = arith.constant 0 : index
    %236 = vector.load %arg10[%c0_87, %c0_88] : memref<8x128xf32, #tpu.memory_space<vmem>>, vector<8x128xf32>
    %c0_89 = arith.constant 0 : index
    %c0_90 = arith.constant 0 : index
    %237 = vector.load %arg11[%c0_89, %c0_90] : memref<8x128xf32, #tpu.memory_space<vmem>>, vector<8x128xf32>
    %238 = arith.index_cast %c5_i32 : i32 to index
    %c0_91 = arith.constant 0 : index
    %c0_92 = arith.constant 0 : index
    %239 = vector.load %arg2[%238, %c0_91, %c0_92] : memref<8x8x512xf32, #tpu.memory_space<vmem>>, vector<1x8x512xf32>
    %240 = vector.shape_cast %239 : vector<1x8x512xf32> to vector<8x512xf32>
    %241 = arith.truncf %236 : vector<8x128xf32> to vector<8x128xbf16>
    %c0_93 = arith.constant 0 : index
    %c0_94 = arith.constant 0 : index
    %242 = vector.load %arg4[%c0_93, %c0_94] : memref<128x512xbf16, #tpu.memory_space<vmem>>, vector<128x512xbf16>
    %cst_95 = arith.constant dense<0.000000e+00> : vector<8x512xf32>
    %243 = tpu.matmul %241, %242, %cst_95 {dimension_numbers = #tpu.dot_dimension_numbers<[1], [0], [0], [1], [0, 0, 1, 1], [], []>} : vector<8x128xbf16>, vector<128x512xbf16>, vector<8x512xf32> -> vector<8x512xf32>
    %244 = arith.addf %240, %243 : vector<8x512xf32>
    %245 = vector.extract_strided_slice %244 {offsets = [0, 0], sizes = [8, 128], strides = [1, 1]} : vector<8x512xf32> to vector<8x128xf32>
    %246 = arith.negf %245 : vector<8x128xf32>
    %247 = math.exp %246 : vector<8x128xf32>
    %cst_96 = arith.constant 1.000000e+00 : f32
    %248 = vector.broadcast %cst_96 : f32 to vector<8x128xf32>
    %249 = arith.addf %248, %247 : vector<8x128xf32>
    %250 = arith.divf %248, %249 : vector<8x128xf32>
    %251 = vector.extract_strided_slice %244 {offsets = [0, 128], sizes = [8, 128], strides = [1, 1]} : vector<8x512xf32> to vector<8x128xf32>
    %252 = arith.negf %251 : vector<8x128xf32>
    %253 = math.exp %252 : vector<8x128xf32>
    %cst_97 = arith.constant 1.000000e+00 : f32
    %254 = vector.broadcast %cst_97 : f32 to vector<8x128xf32>
    %255 = arith.addf %254, %253 : vector<8x128xf32>
    %256 = arith.divf %254, %255 : vector<8x128xf32>
    %257 = vector.extract_strided_slice %244 {offsets = [0, 256], sizes = [8, 128], strides = [1, 1]} : vector<8x512xf32> to vector<8x128xf32>
    %258 = math.tanh %257 : vector<8x128xf32>
    %259 = vector.extract_strided_slice %244 {offsets = [0, 384], sizes = [8, 128], strides = [1, 1]} : vector<8x512xf32> to vector<8x128xf32>
    %260 = arith.negf %259 : vector<8x128xf32>
    %261 = math.exp %260 : vector<8x128xf32>
    %cst_98 = arith.constant 1.000000e+00 : f32
    %262 = vector.broadcast %cst_98 : f32 to vector<8x128xf32>
    %263 = arith.addf %262, %261 : vector<8x128xf32>
    %264 = arith.divf %262, %263 : vector<8x128xf32>
    %265 = arith.mulf %256, %237 : vector<8x128xf32>
    %266 = arith.mulf %250, %258 : vector<8x128xf32>
    %267 = arith.addf %265, %266 : vector<8x128xf32>
    %268 = math.tanh %267 : vector<8x128xf32>
    %269 = arith.mulf %264, %268 : vector<8x128xf32>
    %270 = vector.broadcast %235 : i32 to vector<8x1xi32>
    %271 = arith.cmpi slt, %270, %3 : vector<8x1xi32>
    %272 = vector.shape_cast %271 : vector<8x1xi1> to vector<8x1xi1>
    %273 = vector.broadcast %272 : vector<8x1xi1> to vector<8x128xi1>
    %274 = arith.select %273, %269, %236 : vector<8x128xi1>, vector<8x128xf32>
    %c0_99 = arith.constant 0 : index
    %c0_100 = arith.constant 0 : index
    %275 = vector.load %arg10[%c0_99, %c0_100] : memref<8x128xf32, #tpu.memory_space<vmem>>, vector<8x128xf32>
    tpu.vector_store %arg10[%c0_99, %c0_100], %274 {strides = array<i32>} : memref<8x128xf32, #tpu.memory_space<vmem>>, vector<8x128xf32>,
    %276 = vector.shape_cast %271 : vector<8x1xi1> to vector<8x1xi1>
    %277 = vector.broadcast %276 : vector<8x1xi1> to vector<8x128xi1>
    %278 = arith.select %277, %267, %237 : vector<8x128xi1>, vector<8x128xf32>
    %c0_101 = arith.constant 0 : index
    %c0_102 = arith.constant 0 : index
    %279 = vector.load %arg11[%c0_101, %c0_102] : memref<8x128xf32, #tpu.memory_space<vmem>>, vector<8x128xf32>
    tpu.vector_store %arg11[%c0_101, %c0_102], %278 {strides = array<i32>} : memref<8x128xf32, #tpu.memory_space<vmem>>, vector<8x128xf32>,
    %c6_i32 = arith.constant 6 : i32
    %c8_i32_103 = arith.constant 8 : i32
    %280 = arith.muli %arg1, %c8_i32_103 : i32
    %281 = arith.addi %280, %c6_i32 : i32
    %c0_104 = arith.constant 0 : index
    %c0_105 = arith.constant 0 : index
    %282 = vector.load %arg10[%c0_104, %c0_105] : memref<8x128xf32, #tpu.memory_space<vmem>>, vector<8x128xf32>
    %c0_106 = arith.constant 0 : index
    %c0_107 = arith.constant 0 : index
    %283 = vector.load %arg11[%c0_106, %c0_107] : memref<8x128xf32, #tpu.memory_space<vmem>>, vector<8x128xf32>
    %284 = arith.index_cast %c6_i32 : i32 to index
    %c0_108 = arith.constant 0 : index
    %c0_109 = arith.constant 0 : index
    %285 = vector.load %arg2[%284, %c0_108, %c0_109] : memref<8x8x512xf32, #tpu.memory_space<vmem>>, vector<1x8x512xf32>
    %286 = vector.shape_cast %285 : vector<1x8x512xf32> to vector<8x512xf32>
    %287 = arith.truncf %282 : vector<8x128xf32> to vector<8x128xbf16>
    %c0_110 = arith.constant 0 : index
    %c0_111 = arith.constant 0 : index
    %288 = vector.load %arg4[%c0_110, %c0_111] : memref<128x512xbf16, #tpu.memory_space<vmem>>, vector<128x512xbf16>
    %cst_112 = arith.constant dense<0.000000e+00> : vector<8x512xf32>
    %289 = tpu.matmul %287, %288, %cst_112 {dimension_numbers = #tpu.dot_dimension_numbers<[1], [0], [0], [1], [0, 0, 1, 1], [], []>} : vector<8x128xbf16>, vector<128x512xbf16>, vector<8x512xf32> -> vector<8x512xf32>
    %290 = arith.addf %286, %289 : vector<8x512xf32>
    %291 = vector.extract_strided_slice %290 {offsets = [0, 0], sizes = [8, 128], strides = [1, 1]} : vector<8x512xf32> to vector<8x128xf32>
    %292 = arith.negf %291 : vector<8x128xf32>
    %293 = math.exp %292 : vector<8x128xf32>
    %cst_113 = arith.constant 1.000000e+00 : f32
    %294 = vector.broadcast %cst_113 : f32 to vector<8x128xf32>
    %295 = arith.addf %294, %293 : vector<8x128xf32>
    %296 = arith.divf %294, %295 : vector<8x128xf32>
    %297 = vector.extract_strided_slice %290 {offsets = [0, 128], sizes = [8, 128], strides = [1, 1]} : vector<8x512xf32> to vector<8x128xf32>
    %298 = arith.negf %297 : vector<8x128xf32>
    %299 = math.exp %298 : vector<8x128xf32>
    %cst_114 = arith.constant 1.000000e+00 : f32
    %300 = vector.broadcast %cst_114 : f32 to vector<8x128xf32>
    %301 = arith.addf %300, %299 : vector<8x128xf32>
    %302 = arith.divf %300, %301 : vector<8x128xf32>
    %303 = vector.extract_strided_slice %290 {offsets = [0, 256], sizes = [8, 128], strides = [1, 1]} : vector<8x512xf32> to vector<8x128xf32>
    %304 = math.tanh %303 : vector<8x128xf32>
    %305 = vector.extract_strided_slice %290 {offsets = [0, 384], sizes = [8, 128], strides = [1, 1]} : vector<8x512xf32> to vector<8x128xf32>
    %306 = arith.negf %305 : vector<8x128xf32>
    %307 = math.exp %306 : vector<8x128xf32>
    %cst_115 = arith.constant 1.000000e+00 : f32
    %308 = vector.broadcast %cst_115 : f32 to vector<8x128xf32>
    %309 = arith.addf %308, %307 : vector<8x128xf32>
    %310 = arith.divf %308, %309 : vector<8x128xf32>
    %311 = arith.mulf %302, %283 : vector<8x128xf32>
    %312 = arith.mulf %296, %304 : vector<8x128xf32>
    %313 = arith.addf %311, %312 : vector<8x128xf32>
    %314 = math.tanh %313 : vector<8x128xf32>
    %315 = arith.mulf %310, %314 : vector<8x128xf32>
    %316 = vector.broadcast %281 : i32 to vector<8x1xi32>
    %317 = arith.cmpi slt, %316, %3 : vector<8x1xi32>
    %318 = vector.shape_cast %317 : vector<8x1xi1> to vector<8x1xi1>
    %319 = vector.broadcast %318 : vector<8x1xi1> to vector<8x128xi1>
    %320 = arith.select %319, %315, %282 : vector<8x128xi1>, vector<8x128xf32>
    %c0_116 = arith.constant 0 : index
    %c0_117 = arith.constant 0 : index
    %321 = vector.load %arg10[%c0_116, %c0_117] : memref<8x128xf32, #tpu.memory_space<vmem>>, vector<8x128xf32>
    tpu.vector_store %arg10[%c0_116, %c0_117], %320 {strides = array<i32>} : memref<8x128xf32, #tpu.memory_space<vmem>>, vector<8x128xf32>,
    %322 = vector.shape_cast %317 : vector<8x1xi1> to vector<8x1xi1>
    %323 = vector.broadcast %322 : vector<8x1xi1> to vector<8x128xi1>
    %324 = arith.select %323, %313, %283 : vector<8x128xi1>, vector<8x128xf32>
    %c0_118 = arith.constant 0 : index
    %c0_119 = arith.constant 0 : index
    %325 = vector.load %arg11[%c0_118, %c0_119] : memref<8x128xf32, #tpu.memory_space<vmem>>, vector<8x128xf32>
    tpu.vector_store %arg11[%c0_118, %c0_119], %324 {strides = array<i32>} : memref<8x128xf32, #tpu.memory_space<vmem>>, vector<8x128xf32>,
    %c7_i32 = arith.constant 7 : i32
    %c8_i32_120 = arith.constant 8 : i32
    %326 = arith.muli %arg1, %c8_i32_120 : i32
    %327 = arith.addi %326, %c7_i32 : i32
    %c0_121 = arith.constant 0 : index
    %c0_122 = arith.constant 0 : index
    %328 = vector.load %arg10[%c0_121, %c0_122] : memref<8x128xf32, #tpu.memory_space<vmem>>, vector<8x128xf32>
    %c0_123 = arith.constant 0 : index
    %c0_124 = arith.constant 0 : index
    %329 = vector.load %arg11[%c0_123, %c0_124] : memref<8x128xf32, #tpu.memory_space<vmem>>, vector<8x128xf32>
    %330 = arith.index_cast %c7_i32 : i32 to index
    %c0_125 = arith.constant 0 : index
    %c0_126 = arith.constant 0 : index
    %331 = vector.load %arg2[%330, %c0_125, %c0_126] : memref<8x8x512xf32, #tpu.memory_space<vmem>>, vector<1x8x512xf32>
    %332 = vector.shape_cast %331 : vector<1x8x512xf32> to vector<8x512xf32>
    %333 = arith.truncf %328 : vector<8x128xf32> to vector<8x128xbf16>
    %c0_127 = arith.constant 0 : index
    %c0_128 = arith.constant 0 : index
    %334 = vector.load %arg4[%c0_127, %c0_128] : memref<128x512xbf16, #tpu.memory_space<vmem>>, vector<128x512xbf16>
    %cst_129 = arith.constant dense<0.000000e+00> : vector<8x512xf32>
    %335 = tpu.matmul %333, %334, %cst_129 {dimension_numbers = #tpu.dot_dimension_numbers<[1], [0], [0], [1], [0, 0, 1, 1], [], []>} : vector<8x128xbf16>, vector<128x512xbf16>, vector<8x512xf32> -> vector<8x512xf32>
    %336 = arith.addf %332, %335 : vector<8x512xf32>
    %337 = vector.extract_strided_slice %336 {offsets = [0, 0], sizes = [8, 128], strides = [1, 1]} : vector<8x512xf32> to vector<8x128xf32>
    %338 = arith.negf %337 : vector<8x128xf32>
    %339 = math.exp %338 : vector<8x128xf32>
    %cst_130 = arith.constant 1.000000e+00 : f32
    %340 = vector.broadcast %cst_130 : f32 to vector<8x128xf32>
    %341 = arith.addf %340, %339 : vector<8x128xf32>
    %342 = arith.divf %340, %341 : vector<8x128xf32>
    %343 = vector.extract_strided_slice %336 {offsets = [0, 128], sizes = [8, 128], strides = [1, 1]} : vector<8x512xf32> to vector<8x128xf32>
    %344 = arith.negf %343 : vector<8x128xf32>
    %345 = math.exp %344 : vector<8x128xf32>
    %cst_131 = arith.constant 1.000000e+00 : f32
    %346 = vector.broadcast %cst_131 : f32 to vector<8x128xf32>
    %347 = arith.addf %346, %345 : vector<8x128xf32>
    %348 = arith.divf %346, %347 : vector<8x128xf32>
    %349 = vector.extract_strided_slice %336 {offsets = [0, 256], sizes = [8, 128], strides = [1, 1]} : vector<8x512xf32> to vector<8x128xf32>
    %350 = math.tanh %349 : vector<8x128xf32>
    %351 = vector.extract_strided_slice %336 {offsets = [0, 384], sizes = [8, 128], strides = [1, 1]} : vector<8x512xf32> to vector<8x128xf32>
    %352 = arith.negf %351 : vector<8x128xf32>
    %353 = math.exp %352 : vector<8x128xf32>
    %cst_132 = arith.constant 1.000000e+00 : f32
    %354 = vector.broadcast %cst_132 : f32 to vector<8x128xf32>
    %355 = arith.addf %354, %353 : vector<8x128xf32>
    %356 = arith.divf %354, %355 : vector<8x128xf32>
    %357 = arith.mulf %348, %329 : vector<8x128xf32>
    %358 = arith.mulf %342, %350 : vector<8x128xf32>
    %359 = arith.addf %357, %358 : vector<8x128xf32>
    %360 = math.tanh %359 : vector<8x128xf32>
    %361 = arith.mulf %356, %360 : vector<8x128xf32>
    %362 = vector.broadcast %327 : i32 to vector<8x1xi32>
    %363 = arith.cmpi slt, %362, %3 : vector<8x1xi32>
    %364 = vector.shape_cast %363 : vector<8x1xi1> to vector<8x1xi1>
    %365 = vector.broadcast %364 : vector<8x1xi1> to vector<8x128xi1>
    %366 = arith.select %365, %361, %328 : vector<8x128xi1>, vector<8x128xf32>
    %c0_133 = arith.constant 0 : index
    %c0_134 = arith.constant 0 : index
    %367 = vector.load %arg10[%c0_133, %c0_134] : memref<8x128xf32, #tpu.memory_space<vmem>>, vector<8x128xf32>
    tpu.vector_store %arg10[%c0_133, %c0_134], %366 {strides = array<i32>} : memref<8x128xf32, #tpu.memory_space<vmem>>, vector<8x128xf32>,
    %368 = vector.shape_cast %363 : vector<8x1xi1> to vector<8x1xi1>
    %369 = vector.broadcast %368 : vector<8x1xi1> to vector<8x128xi1>
    %370 = arith.select %369, %359, %329 : vector<8x128xi1>, vector<8x128xf32>
    %c0_135 = arith.constant 0 : index
    %c0_136 = arith.constant 0 : index
    %371 = vector.load %arg11[%c0_135, %c0_136] : memref<8x128xf32, #tpu.memory_space<vmem>>, vector<8x128xf32>
    tpu.vector_store %arg11[%c0_135, %c0_136], %370 {strides = array<i32>} : memref<8x128xf32, #tpu.memory_space<vmem>>, vector<8x128xf32>,
    %c8_i32_137 = arith.constant 8 : i32
    %c0_i32_138 = arith.constant 0 : i32
    %372 = arith.cmpi eq, %arg1, %c0_i32_138 : i32
    %373 = arith.extui %372 : i1 to i32
    %c0_i32_139 = arith.constant 0 : i32
    %374 = arith.cmpi ne, %373, %c0_i32_139 : i32
    scf.if %374 {
      %c0_140 = arith.constant 0 : index
      %c0_141 = arith.constant 0 : index
      %375 = vector.load %arg10[%c0_140, %c0_141] : memref<8x128xf32, #tpu.memory_space<vmem>>, vector<8x128xf32>
      %376 = arith.truncf %375 : vector<8x128xf32> to vector<8x128xbf16>
      %c0_142 = arith.constant 0 : index
      %c0_143 = arith.constant 0 : index
      %377 = vector.load %arg5[%c0_142, %c0_143] : memref<128x128xbf16, #tpu.memory_space<vmem>>, vector<128x128xbf16>
      %cst_144 = arith.constant dense<0.000000e+00> : vector<8x128xf32>
      %378 = tpu.matmul %376, %377, %cst_144 {dimension_numbers = #tpu.dot_dimension_numbers<[1], [0], [0], [1], [0, 0, 1, 1], [], []>} : vector<8x128xbf16>, vector<128x128xbf16>, vector<8x128xf32> -> vector<8x128xf32>
      %c0_145 = arith.constant 0 : index
      %c0_146 = arith.constant 0 : index
      %379 = vector.load %arg6[%c0_145, %c0_146] : memref<1x128xf32, #tpu.memory_space<vmem>>, vector<1x128xf32>
      %380 = vector.broadcast %379 : vector<1x128xf32> to vector<8x128xf32>
      %381 = arith.addf %378, %380 : vector<8x128xf32>
      %cst_147 = arith.constant 0.000000e+00 : f32
      %382 = vector.broadcast %cst_147 : f32 to vector<8x128xf32>
      %383 = arith.maximumf %381, %382 : vector<8x128xf32>
      %c0_148 = arith.constant 0 : index
      %c0_149 = arith.constant 0 : index
      %384 = vector.load %arg7[%c0_148, %c0_149] : memref<1x128xf32, #tpu.memory_space<vmem>>, vector<1x128xf32>
      %385 = vector.broadcast %384 : vector<1x128xf32> to vector<8x128xf32>
      %386 = arith.mulf %383, %385 : vector<8x128xf32>
      %cst_150 = arith.constant dense<0.000000e+00> : vector<8xf32>
      %387 = vector.multi_reduction <add>, %386, %cst_150 [1] : vector<8x128xf32> to vector<8xf32>
      %388 = vector.shape_cast %387 : vector<8xf32> to vector<8x1xf32>
      %c0_151 = arith.constant 0 : index
      %c0_152 = arith.constant 0 : index
      %389 = vector.load %arg8[%c0_151, %c0_152] : memref<1x1xf32, #tpu.memory_space<vmem>>, vector<1x1xf32>
      %390 = vector.broadcast %389 : vector<1x1xf32> to vector<8x1xf32>
      %391 = arith.addf %388, %390 : vector<8x1xf32>
      %392 = arith.negf %391 : vector<8x1xf32>
      %393 = math.exp %392 : vector<8x1xf32>
      %cst_153 = arith.constant 1.000000e+00 : f32
      %394 = vector.broadcast %cst_153 : f32 to vector<8x1xf32>
      %395 = arith.addf %394, %393 : vector<8x1xf32>
      %396 = arith.divf %394, %395 : vector<8x1xf32>
      %c0_154 = arith.constant 0 : index
      %c0_155 = arith.constant 0 : index
      %397 = vector.load %arg9[%c0_154, %c0_155] : memref<8x1xf32, #tpu.memory_space<vmem>>, vector<8x1xf32>
      tpu.vector_store %arg9[%c0_154, %c0_155], %396 {strides = array<i32>} : memref<8x1xf32, #tpu.memory_space<vmem>>, vector<8x1xf32>,
    } else {
    }
    return
  }
  func.func @transform_0(%arg0: i32, %arg1: i32) -> (i32, i32, i32) {
    %c0_i32 = arith.constant 0 : i32
    %c0_i32_0 = arith.constant 0 : i32
    return %arg1, %arg0, %c0_i32 : i32, i32, i32
  }
  func.func @transform_1(%arg0: i32, %arg1: i32) -> (i32, i32) {
    %c0_i32 = arith.constant 0 : i32
    %c0_i32_0 = arith.constant 0 : i32
    return %arg0, %c0_i32 : i32, i32
  }
  func.func @transform_2(%arg0: i32, %arg1: i32) -> (i32, i32) {
    %c0_i32 = arith.constant 0 : i32
    %c0_i32_0 = arith.constant 0 : i32
    %c0_i32_1 = arith.constant 0 : i32
    return %c0_i32, %c0_i32_0 : i32, i32
  }
  func.func @transform_3(%arg0: i32, %arg1: i32) -> (i32, i32) {
    %c0_i32 = arith.constant 0 : i32
    %c0_i32_0 = arith.constant 0 : i32
    %c0_i32_1 = arith.constant 0 : i32
    return %c0_i32, %c0_i32_0 : i32, i32
  }
  func.func @transform_4(%arg0: i32, %arg1: i32) -> (i32, i32) {
    %c0_i32 = arith.constant 0 : i32
    %c0_i32_0 = arith.constant 0 : i32
    %c0_i32_1 = arith.constant 0 : i32
    return %c0_i32, %c0_i32_0 : i32, i32
  }
  func.func @transform_5(%arg0: i32, %arg1: i32) -> (i32, i32) {
    %c0_i32 = arith.constant 0 : i32
    %c0_i32_0 = arith.constant 0 : i32
    %c0_i32_1 = arith.constant 0 : i32
    return %c0_i32, %c0_i32_0 : i32, i32
  }
  func.func @transform_6(%arg0: i32, %arg1: i32) -> (i32, i32) {
    %c0_i32 = arith.constant 0 : i32
    %c0_i32_0 = arith.constant 0 : i32
    %c0_i32_1 = arith.constant 0 : i32
    return %c0_i32, %c0_i32_0 : i32, i32
  }
  func.func @transform_7(%arg0: i32, %arg1: i32) -> (i32, i32) {
    %c0_i32 = arith.constant 0 : i32
    %c0_i32_0 = arith.constant 0 : i32
    return %arg0, %c0_i32 : i32, i32
  }
}

</mosaic_0001>

<bundles_post_ra>
// kernel: tpu_custom_call.1
= control target key start
LH: loop header
LB: loop body
LE: loop exit
PB: predicated region body
PF: predicated region fallthrough
CT: control target
= control target key end

     0   :  { %s4020_s0 = inlined_call_operand.hbm [shape: f32[8,8,512], index: 0, kind: input, shape index: {}]   ;;  %s4021_s1 = inlined_call_operand.vmem [shape: s32[8,1], index: 1, kind: input, shape index: {}]   ;;  %s4022_s2 = inlined_call_operand.hbm [shape: bf16[128,512], index: 2, kind: input, shape index: {}]   ;;  %s4023_s3 = inlined_call_operand.hbm [shape: bf16[128,128], index: 3, kind: input, shape index: {}]   ;;  %s4024_s4 = inlined_call_operand.vmem [shape: f32[1,128], index: 4, kind: input, shape index: {}]   ;;  %s4025_s5 = inlined_call_operand.vmem [shape: f32[1,128], index: 5, kind: input, shape index: {}]   ;;  %s4026_s6 = inlined_call_operand.<no memory space> [shape: f32[1,1], index: 6, kind: input, shape index: {}]   ;;  %s4027_s7 = inlined_call_operand.vmem [shape: f32[8,1], index: 7, kind: output, shape index: {}]  }
   0x1   :  { %v12_v0 = vstv %s4026_s6 }
   0x2   :  { %13 = vst [vmem:[#allocation4] sm:$0x1] %v12_v0 }
   0x3   :  { %14 = vsyncpa [#allocation6], 0 }
   0x4   :  { %15 = vsyncpa [#allocation8], 0  ;;  %s3451_s26 = smov [#allocation7]  }
   0x5   :  { %s35_s27 = sshll.u32 %s3451_s26, 4  ;;  %s36_s27 = int_to_ptr.vmem [resolvable:$true] %s35_s27 }
   0x6   :  { %s3395_s28 = scalar_lea.vmem %s36_s27, 4096  ;;  %p3400_p1 = scmp.lt.s32.totalorder %s36_s27, %s36_s27 }
   0x7   :  { %p3396_p0 = scmp.ne.s32.totalorder %s36_s27, %s3395_s28  ;;  %p3401_p2 = scmp.lt.s32.totalorder %s3395_s28, %s3395_s28 }
   0x9   :  { %p3402_p3 = por %p3401_p2, %p3400_p1 }
   0xb   :  { %p3403_p4 = pnand %p3402_p3, %p3396_p0 }
   0xd   :  { %3406 = shalt.err (!%p3403_p4)
}
   0xe   :  { %s3452_s29 = smov 256   ;;  %s3453_s30 = smov 16  }
   0xf   :  { %41 = dma.hbm_to_vmem [thread:$0]  %s4022_s2, 4096, %s36_s27, [#allocation8], %s3452_s29, %s3452_s29, %s3453_s30  }
  0x10   :  { %s3454_s6 = smov [#allocation5]  }
  0x11   :  { %s21_s10 = sshll.u32 %s3454_s6, 4  ;;  %s22_s10 = int_to_ptr.vmem [resolvable:$true] %s21_s10 }
  0x12   :  { %s3415_s11 = scalar_lea.vmem %s22_s10, 4096  ;;  %p3420_p6 = scmp.lt.s32.totalorder %s22_s10, %s22_s10 }
  0x13   :  { %p3416_p5 = scmp.ne.s32.totalorder %s22_s10, %s3415_s11  ;;  %p3421_p7 = scmp.lt.s32.totalorder %s3415_s11, %s3415_s11 }
  0x15   :  { %p3422_p8 = por %p3421_p7, %p3420_p6 }
  0x17   :  { %p3423_p9 = pnand %p3422_p8, %p3416_p5 }
  0x19   :  { %3426 = shalt.err (!%p3423_p9)
}
  0x1a   :  { %s3455_s12 = smov 512   ;;  %s3456_s13 = smov 32  }
  0x1b   :  { %27 = dma.hbm_to_vmem [thread:$0]  %s4020_s0, 4096, %s22_s10, [#allocation6], %s3455_s12, %s3455_s12, %s3456_s13  }
  0x1c   :  { %s3457_s16 = smov [#allocation9]  }
  0x1d   :  { %s47_s17 = sshll.u32 %s3457_s16, 4  ;;  %s48_s17 = int_to_ptr.vmem [resolvable:$true] %s47_s17 }
  0x1e   :  { %s3435_s2 = scalar_lea.vmem %s48_s17, 1024  ;;  %p3440_p11 = scmp.lt.s32.totalorder %s48_s17, %s48_s17 }
  0x1f   :  { %p3436_p10 = scmp.ne.s32.totalorder %s48_s17, %s3435_s2  ;;  %p3441_p12 = scmp.lt.s32.totalorder %s3435_s2, %s3435_s2 }
  0x21   :  { %p3442_p13 = por %p3441_p12, %p3440_p11 }
  0x23   :  { %p3443_p0 = pnand %p3442_p13, %p3436_p10 }
  0x25   :  { %3446 = shalt.err (!%p3443_p0)
}
  0x26   :  { %s3458_s18 = smov 64   ;;  %s3459_s19 = smov 4  }
  0x27   :  { %53 = dma.hbm_to_vmem [thread:$0]  %s4023_s3, 1024, %s48_s17, [#allocation8], %s3458_s18, %s3458_s18, %s3459_s19  }
  0x28   :  { %3447 = dma.done.wait [#allocation6], 4096  }
  0x29   :  { %3448 = vsyncadd [#allocation6], 4294963200 }
  0x2a   :  { %3449 = dma.done.wait [#allocation8], 5120  }
  0x2b   :  { %3450 = vsyncadd [#allocation8], 4294962176  ;;  %v3460_v1 = vmov 0   ;;  %v3520_v2 = vld [vmem:[#allocation7 + $0xe4] ss:$16 sps:$4 sm:$0xff]   ;;  %v3461_v39 = vmov 0.0|0.0  }
  0x2c   :  { %309 = vmatprep.mubr.bf16.mxu0 %v3460_v1  ;;  %350 = vmatprep.mubr.bf16.mxu1 %v3460_v1  ;;  %v3522_v3 = vld [vmem:[#allocation7 + $0xe0] ss:$16 sps:$4 sm:$0xff]   ;;  %v3525_v4 = vld [vmem:[#allocation7 + $0xc4] ss:$16 sps:$4 sm:$0xff]   ;;  %v3533_v7 = vld [vmem:[#allocation7 + $0xec] ss:$16 sps:$4 sm:$0xff]  }
  0x2d   :  { %3149 = vset.pattern.permute.xlu0 %v3460_v1  ;;  %3150 = vset.pattern.permute.xlu1 %v3460_v1  ;;  %v3528_v5 = vld [vmem:[#allocation7 + $0xc0] ss:$16 sps:$4 sm:$0xff]   ;;  %v3531_v6 = vld [vmem:[#allocation7 + $0xa4] ss:$16 sps:$4 sm:$0xff]   ;;  %v3535_v8 = vld [vmem:[#allocation7 + $0xe8] ss:$16 sps:$4 sm:$0xff]  }
  0x2e   :  { %277 = vmatprep.subr.bf16.mxu0 %v3520_v2  ;;  %v3538_v9 = vld [vmem:[#allocation7 + $0xa0] ss:$16 sps:$4 sm:$0xff]   ;;  %318 = vmatprep.subr.bf16.mxu1 %v3533_v7  ;;  %v3542_v10 = vld [vmem:[#allocation7 + $0x84] ss:$16 sps:$4 sm:$0xff]   ;;  %v3545_v11 = vld [vmem:[#allocation7 + $0xcc] ss:$16 sps:$4 sm:$0xff]  }
  0x2f   :  { %278 = vmatpush1.bf16.msra.mxu0 %v3522_v3  ;;  %319 = vmatpush1.bf16.msra.mxu1 %v3535_v8  ;;  %v3547_v12 = vld [vmem:[#allocation7 + $0xc8] ss:$16 sps:$4 sm:$0xff]   ;;  %v3551_v13 = vld [vmem:[#allocation7 + $0x80] ss:$16 sps:$4 sm:$0xff]   ;;  %v3553_v14 = vld [vmem:[#allocation7 + $0x64] ss:$16 sps:$4 sm:$0xff]  }
  0x30   :  { %279 = vmatprep.subr.bf16.mxu0 %v3525_v4  ;;  %320 = vmatprep.subr.bf16.mxu1 %v3545_v11  ;;  %v3555_v15 = vld [vmem:[#allocation7 + $0xac] ss:$16 sps:$4 sm:$0xff]   ;;  %v3559_v16 = vld [vmem:[#allocation7 + $0xa8] ss:$16 sps:$4 sm:$0xff]   ;;  %v3565_v18 = vld [vmem:[#allocation7 + $0x60] ss:$16 sps:$4 sm:$0xff]  }
  0x31   :  { %v3562_v17 = vld [vmem:[#allocation7 + $0x8c] ss:$16 sps:$4 sm:$0xff]   ;;  %v3568_v19 = vld [vmem:[#allocation7 + $0x44] ss:$16 sps:$4 sm:$0xff]   ;;  %v3571_v20 = vld [vmem:[#allocation7 + $0x88] ss:$16 sps:$4 sm:$0xff]  }
  0x32   :  { %v3574_v21 = vld [vmem:[#allocation7 + $0x6c] ss:$16 sps:$4 sm:$0xff]   ;;  %v3577_v22 = vld [vmem:[#allocation7 + $0x40] ss:$16 sps:$4 sm:$0xff]   ;;  %v3579_v23 = vld [vmem:[#allocation7 + $0x24] ss:$16 sps:$4 sm:$0xff]  }
  0x33   :  { %280 = vmatpush1.bf16.msra.mxu0 %v3528_v5  ;;  %321 = vmatpush1.bf16.msra.mxu1 %v3547_v12  ;;  %v3583_v24 = vld [vmem:[#allocation7 + $0x68] ss:$16 sps:$4 sm:$0xff]   ;;  %v3585_v25 = vld [vmem:[#allocation7 + $0x20] ss:$16 sps:$4 sm:$0xff]   ;;  %v3588_v26 = vld [vmem:[#allocation7 + $0x4c] ss:$16 sps:$4 sm:$0xff]  }
  0x34   :  { %281 = vmatprep.subr.bf16.mxu0 %v3531_v6  ;;  %322 = vmatprep.subr.bf16.mxu1 %v3555_v15  ;;  %v3593_v27 = vld [vmem:[%s4021_s1] sm:$0xff]  ;;  %v3597_v29 = vld [vmem:[#allocation7 + $0x48] ss:$16 sps:$4 sm:$0xff]   ;;  %v82_v55 = vld [vmem:[#allocation5 + $0x10] sm:$0xff] }
  0x35   :  { %v3595_v28 = vld [vmem:[#allocation7 + $0x4] ss:$16 sps:$4 sm:$0xff]   ;;  %vm2836_vm0 = vcmp.gt.s32.totalorder %v3593_v27, 0  ;;  %v3601_v30 = vld [vmem:[#allocation7 + $0x2c] ss:$16 sps:$4 sm:$0xff]   ;;  %vm2872_vm1 = vcmp.gt.s32.totalorder %v3593_v27, 1 }
  0x36   :  { %v389_v31 = vsel %vm2836_vm0, 1, %v3460_v1  ;;  %v3607_v32 = vld [vmem:[#allocation7] ss:$16 sps:$4 sm:$0xff]   ;;  %v3610_v33 = vld [vmem:[#allocation7 + $0x28] ss:$16 sps:$4 sm:$0xff]   ;;  %v711_v34 = vsel %vm2872_vm1, 1, %v3460_v1 }
  0x37   :  { %282 = vmatpush1.bf16.msra.mxu0 %v3538_v9  ;;  %323 = vmatpush1.bf16.msra.mxu1 %v3559_v16  ;;  %v3614_v35 = vld [vmem:[#allocation7 + $0xc] ss:$16 sps:$4 sm:$0xff]   ;;  %vm2980_vm2 = vcmp.gt.s32.totalorder %v3593_v27, 4  ;;  %v3620_v36 = vld [vmem:[#allocation7 + $0x8] ss:$16 sps:$4 sm:$0xff]   ;;  %vm3052_vm3 = vcmp.gt.s32.totalorder %v3593_v27, 6 }
  0x38   :  { %283 = vmatprep.subr.bf16.mxu0 %v3542_v10  ;;  %324 = vmatprep.subr.bf16.mxu1 %v3562_v17  ;;  %v1677_v37 = vsel %vm2980_vm2, 1, %v3460_v1  ;;  %v2321_v38 = vsel %vm3052_vm3, 1, %v3460_v1  ;;  %v80_v40 = vld [vmem:[#allocation5] sm:$0xff]  ;;  %v81_v42 = vld [vmem:[#allocation5 + $0x8] sm:$0xff]  ;;  %v83_v52 = vld [vmem:[#allocation5 + $0x18] sm:$0xff]  ;;  %vm2908_vm6 = vcmp.gt.s32.totalorder %v3593_v27, 2 }
  0x39   :  { %391 = vperm.xlu0 %3149, %v389_v31   ;;  %vm2944_vm7 = vcmp.gt.s32.totalorder %v3593_v27, 3  ;;  %vm3016_vm8 = vcmp.gt.s32.totalorder %v3593_v27, 5  ;;  %vm3088_vm9 = vcmp.gt.s32.totalorder %v3593_v27, 7  ;;  %v405_v27 = vld [vmem:[#allocation5 + $0x38] sm:$0xff]  ;;  %vm3463_vm0 = vmmov 0  }
  0x3a   :  { %vm2793_vm2 = vcmask 7168  }
  0x3b   :  { %284 = vmatpush1.bf16.msra.mxu0 %v3551_v13  ;;  %325 = vmatpush1.bf16.msra.mxu1 %v3571_v20 }
  0x3c   :  { %285 = vmatprep.subr.bf16.mxu0 %v3553_v14  ;;  %326 = vmatprep.subr.bf16.mxu1 %v3574_v21 }
  0x3d   :  { %713 = vperm.xlu0 %3149, %v711_v34  }
  0x3f   :  { %286 = vmatpush1.bf16.msra.mxu0 %v3565_v18  ;;  %327 = vmatpush1.bf16.msra.mxu1 %v3583_v24 }
  0x40   :  { %287 = vmatprep.subr.bf16.mxu0 %v3568_v19  ;;  %328 = vmatprep.subr.bf16.mxu1 %v3588_v26 }
  0x41   :  { %1679 = vperm.xlu0 %3149, %v1677_v37  }
  0x43   :  { %288 = vmatpush1.bf16.msra.mxu0 %v3577_v22  ;;  %329 = vmatpush1.bf16.msra.mxu1 %v3597_v29 }
  0x44   :  { %289 = vmatprep.subr.bf16.mxu0 %v3579_v23  ;;  %330 = vmatprep.subr.bf16.mxu1 %v3601_v30 }
  0x45   :  { %2323 = vperm.xlu0 %3149, %v2321_v38  }
  0x47   :  { %290 = vmatpush1.bf16.msra.mxu0 %v3585_v25  ;;  %331 = vmatpush1.bf16.msra.mxu1 %v3610_v33 }
  0x48   :  { %291 = vmatprep.subr.bf16.mxu0 %v3595_v28  ;;  %332 = vmatprep.subr.bf16.mxu1 %v3614_v35 }
  0x4b   :  { %292 = vmatpush1.bf16.msra.mxu0 %v3607_v32  ;;  %333 = vmatpush1.bf16.msra.mxu1 %v3620_v36 }
  0x4c   :  { %599 = vmatprep.subr.bf16.mxu0 %v3520_v2  ;;  %640 = vmatprep.subr.bf16.mxu1 %v3533_v7 }
  0x4e   :  { %310 = vmatmul.mubr.bf16.vlgmr.msra.gmra.mxu0 %v3461_v39  ;;  %351 = vmatmul.mubr.bf16.vlgmr.msra.gmra.mxu1 %v3461_v39 }
  0x4f   :  { %600 = vmatpush1.bf16.msra.mxu0 %v3522_v3  ;;  %631 = vmatprep.mubr.bf16.mxu0 %v3460_v1 }
  0x50   :  { %601 = vmatprep.subr.bf16.mxu0 %v3525_v4  ;;  %641 = vmatpush1.bf16.msra.mxu1 %v3535_v8 }
  0x51   :  { %642 = vmatprep.subr.bf16.mxu1 %v3545_v11  ;;  %672 = vmatprep.mubr.bf16.mxu1 %v3460_v1 }
  0x53   :  { %602 = vmatpush1.bf16.msra.mxu0 %v3528_v5 }
  0x54   :  { %603 = vmatprep.subr.bf16.mxu0 %v3531_v6  ;;  %643 = vmatpush1.bf16.msra.mxu1 %v3547_v12 }
  0x55   :  { %644 = vmatprep.subr.bf16.mxu1 %v3555_v15 }
  0x57   :  { %604 = vmatpush1.bf16.msra.mxu0 %v3538_v9 }
  0x58   :  { %605 = vmatprep.subr.bf16.mxu0 %v3542_v10  ;;  %645 = vmatpush1.bf16.msra.mxu1 %v3559_v16 }
  0x59   :  { %646 = vmatprep.subr.bf16.mxu1 %v3562_v17 }
  0x5b   :  { %606 = vmatpush1.bf16.msra.mxu0 %v3551_v13 }
  0x5c   :  { %607 = vmatprep.subr.bf16.mxu0 %v3553_v14  ;;  %647 = vmatpush1.bf16.msra.mxu1 %v3571_v20 }
  0x5d   :  { %648 = vmatprep.subr.bf16.mxu1 %v3574_v21 }
  0x5f   :  { %608 = vmatpush1.bf16.msra.mxu0 %v3565_v18 }
  0x60   :  { %609 = vmatprep.subr.bf16.mxu0 %v3568_v19  ;;  %649 = vmatpush1.bf16.msra.mxu1 %v3583_v24 }
  0x61   :  { %650 = vmatprep.subr.bf16.mxu1 %v3588_v26 }
  0x63   :  { %610 = vmatpush1.bf16.msra.mxu0 %v3577_v22 }
  0x64   :  { %611 = vmatprep.subr.bf16.mxu0 %v3579_v23  ;;  %651 = vmatpush1.bf16.msra.mxu1 %v3597_v29 }
  0x65   :  { %652 = vmatprep.subr.bf16.mxu1 %v3601_v30 }
  0x67   :  { %612 = vmatpush1.bf16.msra.mxu0 %v3585_v25 }
  0x68   :  { %613 = vmatprep.subr.bf16.mxu0 %v3595_v28  ;;  %653 = vmatpush1.bf16.msra.mxu1 %v3610_v33 }
  0x69   :  { %654 = vmatprep.subr.bf16.mxu1 %v3614_v35 }
  0x6b   :  { %614 = vmatpush1.bf16.msra.mxu0 %v3607_v32 }
  0x6c   :  { %921 = vmatprep.subr.bf16.mxu0 %v3520_v2  ;;  %655 = vmatpush1.bf16.msra.mxu1 %v3620_v36 }
  0x6d   :  { %962 = vmatprep.subr.bf16.mxu1 %v3533_v7 }
 0x10e   :  { %v311_v41 = vpop.f32.mrf.mxu0  ;;  %v352_v49 = vpop.f32.mrf.mxu1 }
 0x10f   :  { %v359_v43 = vadd.f32 %v311_v41, %v80_v40  ;;  %v361_v57 = vadd.f32 %v352_v49, %v82_v55  ;;  %v3668_v41 = vpop.permute.xlu0 %391 }
 0x110   :  { %v313_v44 = vpop.f32.mrf.mxu0  ;;  %v354_v51 = vpop.f32.mrf.mxu1  ;;  %vm393_vm4 = vcmp.eq.s32.totalorder %v3668_v41, 1 }
 0x111   :  { %v2833_v45 = vmul.f32 -1.442695, %v359_v43  ;;  %v360_v46 = vadd.f32 %v313_v44, %v81_v42  ;;  %v362_v56 = vadd.f32 %v354_v51, %v83_v52  ;;  %vm3101_vm5 = vmpackc.low %vm393_vm4, %vm393_vm4  ;;  %v403_v51 = vld [vmem:[#allocation5 + $0x28] sm:$0xff] }
 0x112   :  { %v315_v47 = vpop.f32.mrf.mxu0  ;;  %v356_v53 = vpop.f32.mrf.mxu1 }
 0x113   :  { %3255 = vpow2.f32 %v2833_v45  ;;  %v2834_v48 = vmul.f32 -1.442695, %v360_v46  ;;  %v2835_v58 = vmul.f32 -1.442695, %v362_v56  ;;  %v1033_v46 = vsel %vm2908_vm6, 1, %v3460_v1 }
 0x114   :  { %v316_v50 = vpop.f32.mrf.mxu0  ;;  %v357_v54 = vpop.f32.mrf.mxu1  ;;  %1035 = vperm.xlu1 %3150, %v1033_v46   ;;  %v1355_v47 = vsel %vm2944_vm7, 1, %v3460_v1 }
 0x115   :  { %3257 = vpow2.f32 %v2834_v48  ;;  %v1999_v48 = vsel %vm3016_vm8, 1, %v3460_v1 }
 0x116   :  { %3259 = vtanh.f32 %v361_v57 }
 0x117   :  { %3261 = vpow2.f32 %v2835_v58 }
 0x118   :  { %1357 = vperm.xlu1 %3150, %v1355_v47  }
 0x11c   :  { %2001 = vperm.xlu1 %3150, %v1999_v48  }
 0x120   :  { %v3256_v59 = vpop.eup %3255 }
 0x121   :  { %v366_v60 = vadd.f32 1.0, %v3256_v59 }
 0x122   :  { %v3258_v61 = vpop.eup %3257 }
 0x123   :  { %3263 = vrcp.f32 %v366_v60  ;;  %v372_v62 = vadd.f32 1.0, %v3258_v61  ;;  %v3260_v63 = vpop.eup %3259 }
 0x124   :  { %v3262_v0 = vpop.eup %3261 }
 0x125   :  { %3265 = vrcp.f32 %v372_v62  ;;  %v379_v37 = vadd.f32 1.0, %v3262_v0 }
 0x127   :  { %3267 = vrcp.f32 %v379_v37 }
 0x130   :  { %v3264_v31 = vpop.eup %3263 }
 0x131   :  { %v383_v39 = vmul.f32 %v3264_v31, %v3260_v63  ;;  %v404_v63 = vld [vmem:[#allocation5 + $0x30] sm:$0xff] }
 0x132   :  { %v3266_v34 = vpop.eup %3265 }
 0x133   :  { %v382_v38 = vmul.f32 0.0, %v3266_v34 }
 0x134   :  { %v3268_v42 = vpop.eup %3267 }
 0x135   :  { %v3665_v40 = vadd.f32 %v383_v39, %v382_v38 }
 0x137   :  { %3269 = vtanh.f32 %v3665_v40  ;;  %v396_v47 = vsel %vm393_vm4, %v3665_v40, 0.0 }
 0x144   :  { %v3270_v43 = vpop.eup %3269 }
 0x145   :  { %v3670_v44 = vmul.f32 %v3270_v43, %v3268_v42 }
 0x147   :  { %v3102_v45 = vpack.c.bf16 %v3670_v44, %v3670_v44 }
 0x149   :  { %3103 = vmatmul.mubr.msk.bf16.vlgmr.msra.gmra.mxu0 %vm3101_vm5, %v3102_v45  ;;  %3106 = vmatmul.mubr.msk.bf16.vlgmr.msra.gmra.mxu1 %vm3101_vm5, %v3102_v45 }
 0x14a   :  { %922 = vmatpush1.bf16.msra.mxu0 %v3522_v3  ;;  %963 = vmatpush1.bf16.msra.mxu1 %v3535_v8 }
 0x14b   :  { %923 = vmatprep.subr.bf16.mxu0 %v3525_v4  ;;  %964 = vmatprep.subr.bf16.mxu1 %v3545_v11 }
 0x14c   :  { %953 = vmatprep.mubr.bf16.mxu0 %v3460_v1  ;;  %994 = vmatprep.mubr.bf16.mxu1 %v3460_v1 }
 0x14e   :  { %924 = vmatpush1.bf16.msra.mxu0 %v3528_v5  ;;  %965 = vmatpush1.bf16.msra.mxu1 %v3547_v12 }
 0x14f   :  { %925 = vmatprep.subr.bf16.mxu0 %v3531_v6  ;;  %966 = vmatprep.subr.bf16.mxu1 %v3555_v15 }
 0x152   :  { %926 = vmatpush1.bf16.msra.mxu0 %v3538_v9  ;;  %967 = vmatpush1.bf16.msra.mxu1 %v3559_v16 }
 0x153   :  { %927 = vmatprep.subr.bf16.mxu0 %v3542_v10  ;;  %968 = vmatprep.subr.bf16.mxu1 %v3562_v17 }
 0x156   :  { %928 = vmatpush1.bf16.msra.mxu0 %v3551_v13  ;;  %969 = vmatpush1.bf16.msra.mxu1 %v3571_v20 }
 0x157   :  { %929 = vmatprep.subr.bf16.mxu0 %v3553_v14  ;;  %970 = vmatprep.subr.bf16.mxu1 %v3574_v21 }
 0x15a   :  { %930 = vmatpush1.bf16.msra.mxu0 %v3565_v18  ;;  %971 = vmatpush1.bf16.msra.mxu1 %v3583_v24 }
 0x15b   :  { %931 = vmatprep.subr.bf16.mxu0 %v3568_v19  ;;  %972 = vmatprep.subr.bf16.mxu1 %v3588_v26 }
 0x15e   :  { %932 = vmatpush1.bf16.msra.mxu0 %v3577_v22  ;;  %973 = vmatpush1.bf16.msra.mxu1 %v3597_v29 }
 0x15f   :  { %933 = vmatprep.subr.bf16.mxu0 %v3579_v23  ;;  %974 = vmatprep.subr.bf16.mxu1 %v3601_v30 }
 0x162   :  { %934 = vmatpush1.bf16.msra.mxu0 %v3585_v25  ;;  %975 = vmatpush1.bf16.msra.mxu1 %v3610_v33 }
 0x163   :  { %935 = vmatprep.subr.bf16.mxu0 %v3595_v28  ;;  %976 = vmatprep.subr.bf16.mxu1 %v3614_v35 }
 0x166   :  { %936 = vmatpush1.bf16.msra.mxu0 %v3607_v32  ;;  %977 = vmatpush1.bf16.msra.mxu1 %v3620_v36 }
 0x167   :  { %1243 = vmatprep.subr.bf16.mxu0 %v3520_v2  ;;  %1284 = vmatprep.subr.bf16.mxu1 %v3533_v7  ;;  %v2643_v2 = vsel %vm3088_vm9, 1, %v3460_v1  ;;  %v402_v7 = vld [vmem:[#allocation5 + $0x20] sm:$0xff] }
 0x168   :  { %2645 = vperm.xlu1 %3150, %v2643_v2  }
 0x209   :  { %v633_v49 = vpop.f32.mrf.mxu0  ;;  %v674_v50 = vpop.f32.mrf.mxu1 }
 0x20a   :  { %v681_v52 = vadd.f32 %v633_v49, %v402_v7  ;;  %v683_v34 = vadd.f32 %v674_v50, %v404_v63  ;;  %v714_v49 = vpop.permute.xlu0 %713  ;;  %v3777_v63 = vld [vmem:[#allocation7 + $0xec] ss:$16 sps:$4 sm:$0xff]  }
 0x20b   :  { %v635_v53 = vpop.f32.mrf.mxu0  ;;  %v676_v54 = vpop.f32.mrf.mxu1  ;;  %vm715_vm10 = vcmp.eq.s32.totalorder %v714_v49, 1  ;;  %v3821_v49 = vld [vmem:[#allocation7 + $0x64] ss:$16 sps:$4 sm:$0xff]  }
 0x20c   :  { %v2869_v55 = vmul.f32 -1.442695, %v681_v52  ;;  %v682_v56 = vadd.f32 %v635_v53, %v403_v51  ;;  %v684_v62 = vadd.f32 %v676_v54, %v405_v27 }
 0x20d   :  { %v637_v57 = vpop.f32.mrf.mxu0  ;;  %v678_v58 = vpop.f32.mrf.mxu1 }
 0x20e   :  { %3271 = vpow2.f32 %v2869_v55  ;;  %v2870_v59 = vmul.f32 -1.442695, %v682_v56  ;;  %v2871_v0 = vmul.f32 -1.442695, %v684_v62  ;;  %v394_v55 = vsel %vm393_vm4, %v3670_v44, 0.0 }
 0x20f   :  { %v638_v60 = vpop.f32.mrf.mxu0  ;;  %v679_v61 = vpop.f32.mrf.mxu1  ;;  %v3775_v62 = vld [vmem:[#allocation7 + $0xe4] ss:$16 sps:$4 sm:$0xff]  }
 0x210   :  { %3273 = vpow2.f32 %v2870_v59 }
 0x211   :  { %3275 = vpow2.f32 %v2871_v0  ;;  %v3779_v0 = vld [vmem:[#allocation7 + $0xe0] ss:$16 sps:$4 sm:$0xff]  }
 0x21b   :  { %v3272_v31 = vpop.eup %3271 }
 0x21c   :  { %v688_v37 = vadd.f32 1.0, %v3272_v31  ;;  %v3781_v31 = vld [vmem:[#allocation7 + $0xe8] ss:$16 sps:$4 sm:$0xff]  }
 0x21d   :  { %v3274_v38 = vpop.eup %3273 }
 0x21e   :  { %3277 = vrcp.f32 %v688_v37  ;;  %v694_v39 = vadd.f32 1.0, %v3274_v38  ;;  %v3276_v42 = vpop.eup %3275  ;;  %v3789_v37 = vld [vmem:[#allocation7 + $0xcc] ss:$16 sps:$4 sm:$0xff]   ;;  %v3791_v38 = vld [vmem:[#allocation7 + $0xc0] ss:$16 sps:$4 sm:$0xff]  }
 0x21f   :  { %3279 = vtanh.f32 %v683_v34  ;;  %v701_v48 = vadd.f32 1.0, %v3276_v42  ;;  %v3787_v34 = vld [vmem:[#allocation7 + $0xc4] ss:$16 sps:$4 sm:$0xff]  }
 0x220   :  { %3281 = vrcp.f32 %v694_v39  ;;  %v3793_v39 = vld [vmem:[#allocation7 + $0xc8] ss:$16 sps:$4 sm:$0xff]   ;;  %v3799_v42 = vld [vmem:[#allocation7 + $0xa4] ss:$16 sps:$4 sm:$0xff]  }
 0x221   :  { %3283 = vrcp.f32 %v701_v48  ;;  %v3813_v48 = vld [vmem:[#allocation7 + $0x8c] ss:$16 sps:$4 sm:$0xff]  }
 0x22b   :  { %v3278_v43 = vpop.eup %3277 }
 0x22c   :  { %v3280_v45 = vpop.eup %3279 }
 0x22d   :  { %v3282_v46 = vpop.eup %3281  ;;  %v705_v2 = vmul.f32 %v3280_v45, %v3278_v43  ;;  %v3801_v43 = vld [vmem:[#allocation7 + $0xac] ss:$16 sps:$4 sm:$0xff]   ;;  %v3803_v45 = vld [vmem:[#allocation7 + $0xa0] ss:$16 sps:$4 sm:$0xff]  }
 0x22e   :  { %v704_v7 = vmul.f32 %v3282_v46, %v396_v47  ;;  %v3284_v52 = vpop.eup %3283  ;;  %v3805_v46 = vld [vmem:[#allocation7 + $0xa8] ss:$16 sps:$4 sm:$0xff]  }
 0x230   :  { %v706_v50 = vadd.f32 %v705_v2, %v704_v7  ;;  %v3815_v2 = vld [vmem:[#allocation7 + $0x80] ss:$16 sps:$4 sm:$0xff]   ;;  %v3817_v7 = vld [vmem:[#allocation7 + $0x88] ss:$16 sps:$4 sm:$0xff]  }
 0x232   :  { %3285 = vtanh.f32 %v706_v50  ;;  %v3723_v51 = vsel %vm715_vm10, %v706_v50, %v396_v47  ;;  %v3811_v47 = vld [vmem:[#allocation7 + $0x84] ss:$16 sps:$4 sm:$0xff]   ;;  %v3825_v50 = vld [vmem:[#allocation7 + $0x60] ss:$16 sps:$4 sm:$0xff]  }
 0x23f   :  { %v3286_v53 = vpop.eup %3285 }
 0x240   :  { %v708_v54 = vmul.f32 %v3286_v53, %v3284_v52  ;;  %v3829_v52 = vld [vmem:[#allocation7 + $0x6c] ss:$16 sps:$4 sm:$0xff]   ;;  %v3832_v53 = vld [vmem:[#allocation7 + $0x44] ss:$16 sps:$4 sm:$0xff]  }
 0x242   :  { %v3728_v56 = vsel %vm715_vm10, %v708_v54, %v394_v55  ;;  %v3834_v54 = vld [vmem:[#allocation7 + $0x4c] ss:$16 sps:$4 sm:$0xff]   ;;  %v3839_v55 = vld [vmem:[#allocation7 + $0x40] ss:$16 sps:$4 sm:$0xff]  }
 0x243   :  { %v728_v40 = vpack.c.bf16 %v3728_v56, %v3728_v56 }
 0x245   :  { %954 = vmatmul.mubr.bf16.vlgmr.msra.gmra.mxu0 %v728_v40  ;;  %995 = vmatmul.mubr.bf16.vlgmr.msra.gmra.mxu1 %v728_v40  ;;  %v3845_v40 = vld [vmem:[#allocation7 + $0x24] ss:$16 sps:$4 sm:$0xff]  }
 0x246   :  { %1244 = vmatpush1.bf16.msra.mxu0 %v3522_v3  ;;  %1285 = vmatpush1.bf16.msra.mxu1 %v3535_v8  ;;  %v724_v3 = vld [vmem:[#allocation5 + $0x40] sm:$0xff] }
 0x247   :  { %1245 = vmatprep.subr.bf16.mxu0 %v3525_v4  ;;  %1286 = vmatprep.subr.bf16.mxu1 %v3545_v11 }
 0x248   :  { %1275 = vmatprep.mubr.bf16.mxu0 %v3460_v1  ;;  %1316 = vmatprep.mubr.bf16.mxu1 %v3460_v1 }
 0x24a   :  { %1246 = vmatpush1.bf16.msra.mxu0 %v3528_v5  ;;  %1287 = vmatpush1.bf16.msra.mxu1 %v3547_v12 }
 0x24b   :  { %1247 = vmatprep.subr.bf16.mxu0 %v3531_v6  ;;  %1288 = vmatprep.subr.bf16.mxu1 %v3555_v15  ;;  %v725_v6 = vld [vmem:[#allocation5 + $0x48] sm:$0xff] }
 0x24e   :  { %1248 = vmatpush1.bf16.msra.mxu0 %v3538_v9  ;;  %1289 = vmatpush1.bf16.msra.mxu1 %v3559_v16 }
 0x24f   :  { %1249 = vmatprep.subr.bf16.mxu0 %v3542_v10  ;;  %1290 = vmatprep.subr.bf16.mxu1 %v3562_v17 }
 0x252   :  { %1250 = vmatpush1.bf16.msra.mxu0 %v3551_v13  ;;  %1291 = vmatpush1.bf16.msra.mxu1 %v3571_v20  ;;  %v726_v20 = vld [vmem:[#allocation5 + $0x50] sm:$0xff] }
 0x253   :  { %1251 = vmatprep.subr.bf16.mxu0 %v3553_v14  ;;  %1292 = vmatprep.subr.bf16.mxu1 %v3574_v21 }
 0x256   :  { %1252 = vmatpush1.bf16.msra.mxu0 %v3565_v18  ;;  %1293 = vmatpush1.bf16.msra.mxu1 %v3583_v24  ;;  %v727_v18 = vld [vmem:[#allocation5 + $0x58] sm:$0xff] }
 0x257   :  { %1253 = vmatprep.subr.bf16.mxu0 %v3568_v19  ;;  %1294 = vmatprep.subr.bf16.mxu1 %v3588_v26 }
 0x25a   :  { %1254 = vmatpush1.bf16.msra.mxu0 %v3577_v22  ;;  %1295 = vmatpush1.bf16.msra.mxu1 %v3597_v29 }
 0x25b   :  { %1255 = vmatprep.subr.bf16.mxu0 %v3579_v23  ;;  %1296 = vmatprep.subr.bf16.mxu1 %v3601_v30 }
 0x25e   :  { %1256 = vmatpush1.bf16.msra.mxu0 %v3585_v25  ;;  %1297 = vmatpush1.bf16.msra.mxu1 %v3610_v33 }
 0x25f   :  { %1257 = vmatprep.subr.bf16.mxu0 %v3595_v28  ;;  %1298 = vmatprep.subr.bf16.mxu1 %v3614_v35 }
 0x262   :  { %1258 = vmatpush1.bf16.msra.mxu0 %v3607_v32  ;;  %1299 = vmatpush1.bf16.msra.mxu1 %v3620_v36  ;;  %v1036_v32 = vpop.permute.xlu1 %1035 }
 0x263   :  { %vm1037_vm11 = vcmp.eq.s32.totalorder %v1036_v32, 1  ;;  %1565 = vmatprep.subr.bf16.mxu0 %v3775_v62  ;;  %1606 = vmatprep.subr.bf16.mxu1 %v3777_v63 }
 0x305   :  { %v955_v4 = vpop.f32.mrf.mxu0  ;;  %v996_v5 = vpop.f32.mrf.mxu1 }
 0x306   :  { %v1003_v8 = vadd.f32 %v955_v4, %v724_v3  ;;  %v1005_v23 = vadd.f32 %v996_v5, %v726_v20  ;;  %v3847_v3 = vld [vmem:[#allocation7 + $0x2c] ss:$16 sps:$4 sm:$0xff]   ;;  %v3851_v4 = vld [vmem:[#allocation7 + $0x20] ss:$16 sps:$4 sm:$0xff]   ;;  %v3853_v5 = vld [vmem:[#allocation7 + $0x28] ss:$16 sps:$4 sm:$0xff]  }
 0x307   :  { %v957_v9 = vpop.f32.mrf.mxu0  ;;  %v998_v10 = vpop.f32.mrf.mxu1 }
 0x308   :  { %v2905_v11 = vmul.f32 -1.442695, %v1003_v8  ;;  %v1004_v12 = vadd.f32 %v957_v9, %v725_v6  ;;  %v1006_v19 = vadd.f32 %v998_v10, %v727_v18  ;;  %v3857_v6 = vld [vmem:[#allocation7 + $0x4] ss:$16 sps:$4 sm:$0xff]   ;;  %v3859_v8 = vld [vmem:[#allocation7 + $0xc] ss:$16 sps:$4 sm:$0xff]  }
 0x309   :  { %v959_v13 = vpop.f32.mrf.mxu0  ;;  %v1000_v14 = vpop.f32.mrf.mxu1  ;;  %v3863_v9 = vld [vmem:[#allocation7] ss:$16 sps:$4 sm:$0xff]   ;;  %v3865_v10 = vld [vmem:[#allocation7 + $0x8] ss:$16 sps:$4 sm:$0xff]  }
 0x30a   :  { %3287 = vpow2.f32 %v2905_v11  ;;  %v2906_v15 = vmul.f32 -1.442695, %v1004_v12  ;;  %v2907_v21 = vmul.f32 -1.442695, %v1006_v19  ;;  %v1046_v11 = vld [vmem:[#allocation5 + $0x60] sm:$0xff]  ;;  %v1047_v14 = vld [vmem:[#allocation5 + $0x68] sm:$0xff] }
 0x30b   :  { %v960_v16 = vpop.f32.mrf.mxu0  ;;  %v1001_v17 = vpop.f32.mrf.mxu1 }
 0x30c   :  { %3289 = vpow2.f32 %v2906_v15 }
 0x30d   :  { %3291 = vpow2.f32 %v2907_v21 }
 0x317   :  { %v3288_v22 = vpop.eup %3287 }
 0x318   :  { %v1010_v24 = vadd.f32 1.0, %v3288_v22 }
 0x319   :  { %v3290_v25 = vpop.eup %3289 }
 0x31a   :  { %3293 = vrcp.f32 %v1010_v24  ;;  %v1016_v26 = vadd.f32 1.0, %v3290_v25  ;;  %v3292_v28 = vpop.eup %3291  ;;  %v1049_v25 = vld [vmem:[#allocation5 + $0x78] sm:$0xff] }
 0x31b   :  { %3295 = vtanh.f32 %v1005_v23  ;;  %v1023_v35 = vadd.f32 1.0, %v3292_v28  ;;  %v1048_v28 = vld [vmem:[#allocation5 + $0x70] sm:$0xff] }
 0x31c   :  { %3297 = vrcp.f32 %v1016_v26 }
 0x31d   :  { %3299 = vrcp.f32 %v1023_v35 }
 0x327   :  { %v3294_v29 = vpop.eup %3293 }
 0x328   :  { %v3296_v30 = vpop.eup %3295 }
 0x329   :  { %v3298_v33 = vpop.eup %3297  ;;  %v1027_v41 = vmul.f32 %v3296_v30, %v3294_v29 }
 0x32a   :  { %v1026_v36 = vmul.f32 %v3298_v33, %v3723_v51  ;;  %v3300_v58 = vpop.eup %3299 }
 0x32c   :  { %v1028_v44 = vadd.f32 %v1027_v41, %v1026_v36 }
 0x32e   :  { %3301 = vtanh.f32 %v1028_v44  ;;  %v3766_v57 = vsel %vm1037_vm11, %v1028_v44, %v3723_v51  ;;  %v3827_v51 = vld [vmem:[#allocation7 + $0x68] ss:$16 sps:$4 sm:$0xff]  }
 0x33b   :  { %v3302_v59 = vpop.eup %3301 }
 0x33c   :  { %v1030_v60 = vmul.f32 %v3302_v59, %v3300_v58 }
 0x33e   :  { %v3769_v61 = vsel %vm1037_vm11, %v1030_v60, %v3728_v56  ;;  %v3841_v56 = vld [vmem:[#allocation7 + $0x48] ss:$16 sps:$4 sm:$0xff]  }
 0x33f   :  { %v1050_v27 = vpack.c.bf16 %v3769_v61, %v3769_v61 }
 0x341   :  { %1276 = vmatmul.mubr.bf16.vlgmr.msra.gmra.mxu0 %v1050_v27  ;;  %1317 = vmatmul.mubr.bf16.vlgmr.msra.gmra.mxu1 %v1050_v27 }
 0x342   :  { %1597 = vmatprep.mubr.bf16.mxu0 %v3460_v1  ;;  %1638 = vmatprep.mubr.bf16.mxu1 %v3460_v1 }
 0x343   :  { %1566 = vmatpush1.bf16.msra.mxu0 %v3779_v0  ;;  %1607 = vmatpush1.bf16.msra.mxu1 %v3781_v31 }
 0x344   :  { %1567 = vmatprep.subr.bf16.mxu0 %v3787_v34  ;;  %1608 = vmatprep.subr.bf16.mxu1 %v3789_v37 }
 0x347   :  { %1568 = vmatpush1.bf16.msra.mxu0 %v3791_v38  ;;  %1609 = vmatpush1.bf16.msra.mxu1 %v3793_v39 }
 0x348   :  { %1569 = vmatprep.subr.bf16.mxu0 %v3799_v42  ;;  %1610 = vmatprep.subr.bf16.mxu1 %v3801_v43 }
 0x34b   :  { %1570 = vmatpush1.bf16.msra.mxu0 %v3803_v45  ;;  %1611 = vmatpush1.bf16.msra.mxu1 %v3805_v46 }
 0x34c   :  { %1571 = vmatprep.subr.bf16.mxu0 %v3811_v47  ;;  %1612 = vmatprep.subr.bf16.mxu1 %v3813_v48 }
 0x34f   :  { %1572 = vmatpush1.bf16.msra.mxu0 %v3815_v2  ;;  %1613 = vmatpush1.bf16.msra.mxu1 %v3817_v7 }
 0x350   :  { %1573 = vmatprep.subr.bf16.mxu0 %v3821_v49  ;;  %1614 = vmatprep.subr.bf16.mxu1 %v3829_v52 }
 0x353   :  { %1574 = vmatpush1.bf16.msra.mxu0 %v3825_v50  ;;  %1615 = vmatpush1.bf16.msra.mxu1 %v3827_v51 }
 0x354   :  { %1575 = vmatprep.subr.bf16.mxu0 %v3832_v53  ;;  %1616 = vmatprep.subr.bf16.mxu1 %v3834_v54 }
 0x357   :  { %1576 = vmatpush1.bf16.msra.mxu0 %v3839_v55  ;;  %1617 = vmatpush1.bf16.msra.mxu1 %v3841_v56 }
 0x358   :  { %1577 = vmatprep.subr.bf16.mxu0 %v3845_v40  ;;  %1618 = vmatprep.subr.bf16.mxu1 %v3847_v3 }
 0x35b   :  { %1578 = vmatpush1.bf16.msra.mxu0 %v3851_v4  ;;  %1619 = vmatpush1.bf16.msra.mxu1 %v3853_v5 }
 0x35c   :  { %1579 = vmatprep.subr.bf16.mxu0 %v3857_v6  ;;  %1620 = vmatprep.subr.bf16.mxu1 %v3859_v8 }
 0x35f   :  { %1580 = vmatpush1.bf16.msra.mxu0 %v3863_v9  ;;  %1621 = vmatpush1.bf16.msra.mxu1 %v3865_v10 }
 0x360   :  { %1887 = vmatprep.subr.bf16.mxu0 %v3775_v62  ;;  %1928 = vmatprep.subr.bf16.mxu1 %v3777_v63 }
 0x401   :  { %v1277_v12 = vpop.f32.mrf.mxu0  ;;  %v1318_v13 = vpop.f32.mrf.mxu1 }
 0x402   :  { %v1325_v15 = vadd.f32 %v1277_v12, %v1046_v11  ;;  %v1327_v32 = vadd.f32 %v1318_v13, %v1048_v28  ;;  %v1358_v12 = vpop.permute.xlu1 %1357 }
 0x403   :  { %v1279_v16 = vpop.f32.mrf.mxu0  ;;  %v1320_v17 = vpop.f32.mrf.mxu1  ;;  %vm1359_vm12 = vcmp.eq.s32.totalorder %v1358_v12, 1 }
 0x404   :  { %v2941_v18 = vmul.f32 -1.442695, %v1325_v15  ;;  %v1326_v19 = vadd.f32 %v1279_v16, %v1047_v14  ;;  %v1328_v26 = vadd.f32 %v1320_v17, %v1049_v25 }
 0x405   :  { %v1281_v20 = vpop.f32.mrf.mxu0  ;;  %v1322_v21 = vpop.f32.mrf.mxu1 }
 0x406   :  { %3303 = vpow2.f32 %v2941_v18  ;;  %v2942_v22 = vmul.f32 -1.442695, %v1326_v19  ;;  %v2943_v29 = vmul.f32 -1.442695, %v1328_v26  ;;  %v1369_v21 = vld [vmem:[#allocation5 + $0x88] sm:$0xff] }
 0x407   :  { %v1282_v23 = vpop.f32.mrf.mxu0  ;;  %v1323_v24 = vpop.f32.mrf.mxu1 }
 0x408   :  { %3305 = vpow2.f32 %v2942_v22 }
 0x409   :  { %3307 = vpow2.f32 %v2943_v29 }
 0x413   :  { %v3304_v30 = vpop.eup %3303 }
 0x414   :  { %v1332_v33 = vadd.f32 1.0, %v3304_v30 }
 0x415   :  { %v3306_v35 = vpop.eup %3305 }
 0x416   :  { %3309 = vrcp.f32 %v1332_v33  ;;  %v1338_v36 = vadd.f32 1.0, %v3306_v35  ;;  %v3308_v41 = vpop.eup %3307  ;;  %v1371_v35 = vld [vmem:[#allocation5 + $0x98] sm:$0xff] }
 0x417   :  { %3311 = vtanh.f32 %v1327_v32  ;;  %v1345_v60 = vadd.f32 1.0, %v3308_v41  ;;  %v1370_v41 = vld [vmem:[#allocation5 + $0x90] sm:$0xff] }
 0x418   :  { %3313 = vrcp.f32 %v1338_v36 }
 0x419   :  { %3315 = vrcp.f32 %v1345_v60 }
 0x423   :  { %v3310_v44 = vpop.eup %3309 }
 0x424   :  { %v3312_v58 = vpop.eup %3311 }
 0x425   :  { %v3314_v59 = vpop.eup %3313  ;;  %v1349_v27 = vmul.f32 %v3312_v58, %v3310_v44 }
 0x426   :  { %v1348_v11 = vmul.f32 %v3314_v59, %v3766_v57  ;;  %v3316_v15 = vpop.eup %3315 }
 0x428   :  { %v1350_v14 = vadd.f32 %v1349_v27, %v1348_v11 }
 0x42a   :  { %3317 = vtanh.f32 %v1350_v14  ;;  %v3875_v13 = vsel %vm1359_vm12, %v1350_v14, %v3766_v57  ;;  %v1368_v57 = vld [vmem:[#allocation5 + $0x80] sm:$0xff] }
 0x437   :  { %v3318_v16 = vpop.eup %3317 }
 0x438   :  { %v1352_v17 = vmul.f32 %v3318_v16, %v3316_v15 }
 0x43a   :  { %v3878_v18 = vsel %vm1359_vm12, %v1352_v17, %v3769_v61 }
 0x43b   :  { %v1372_v19 = vpack.c.bf16 %v3878_v18, %v3878_v18 }
 0x43d   :  { %1598 = vmatmul.mubr.bf16.vlgmr.msra.gmra.mxu0 %v1372_v19  ;;  %1639 = vmatmul.mubr.bf16.vlgmr.msra.gmra.mxu1 %v1372_v19 }
 0x43e   :  { %1888 = vmatpush1.bf16.msra.mxu0 %v3779_v0  ;;  %1929 = vmatpush1.bf16.msra.mxu1 %v3781_v31 }
 0x43f   :  { %1889 = vmatprep.subr.bf16.mxu0 %v3787_v34  ;;  %1930 = vmatprep.subr.bf16.mxu1 %v3789_v37 }
 0x440   :  { %1919 = vmatprep.mubr.bf16.mxu0 %v3460_v1  ;;  %1960 = vmatprep.mubr.bf16.mxu1 %v3460_v1 }
 0x442   :  { %1890 = vmatpush1.bf16.msra.mxu0 %v3791_v38  ;;  %1931 = vmatpush1.bf16.msra.mxu1 %v3793_v39 }
 0x443   :  { %1891 = vmatprep.subr.bf16.mxu0 %v3799_v42  ;;  %1932 = vmatprep.subr.bf16.mxu1 %v3801_v43 }
 0x446   :  { %1892 = vmatpush1.bf16.msra.mxu0 %v3803_v45  ;;  %1933 = vmatpush1.bf16.msra.mxu1 %v3805_v46 }
 0x447   :  { %1893 = vmatprep.subr.bf16.mxu0 %v3811_v47  ;;  %1934 = vmatprep.subr.bf16.mxu1 %v3813_v48 }
 0x44a   :  { %1894 = vmatpush1.bf16.msra.mxu0 %v3815_v2  ;;  %1935 = vmatpush1.bf16.msra.mxu1 %v3817_v7 }
 0x44b   :  { %1895 = vmatprep.subr.bf16.mxu0 %v3821_v49  ;;  %1936 = vmatprep.subr.bf16.mxu1 %v3829_v52 }
 0x44e   :  { %1896 = vmatpush1.bf16.msra.mxu0 %v3825_v50  ;;  %1937 = vmatpush1.bf16.msra.mxu1 %v3827_v51 }
 0x44f   :  { %1897 = vmatprep.subr.bf16.mxu0 %v3832_v53  ;;  %1938 = vmatprep.subr.bf16.mxu1 %v3834_v54 }
 0x452   :  { %1898 = vmatpush1.bf16.msra.mxu0 %v3839_v55  ;;  %1939 = vmatpush1.bf16.msra.mxu1 %v3841_v56 }
 0x453   :  { %1899 = vmatprep.subr.bf16.mxu0 %v3845_v40  ;;  %1940 = vmatprep.subr.bf16.mxu1 %v3847_v3 }
 0x456   :  { %1900 = vmatpush1.bf16.msra.mxu0 %v3851_v4  ;;  %1941 = vmatpush1.bf16.msra.mxu1 %v3853_v5 }
 0x457   :  { %1901 = vmatprep.subr.bf16.mxu0 %v3857_v6  ;;  %1942 = vmatprep.subr.bf16.mxu1 %v3859_v8 }
 0x45a   :  { %1902 = vmatpush1.bf16.msra.mxu0 %v3863_v9  ;;  %1943 = vmatpush1.bf16.msra.mxu1 %v3865_v10 }
 0x45b   :  { %2209 = vmatprep.subr.bf16.mxu0 %v3775_v62  ;;  %2250 = vmatprep.subr.bf16.mxu1 %v3777_v63 }
 0x4fd   :  { %v1599_v61 = vpop.f32.mrf.mxu0  ;;  %v1640_v20 = vpop.f32.mrf.mxu1 }
 0x4fe   :  { %v1647_v22 = vadd.f32 %v1599_v61, %v1368_v57  ;;  %v1649_v59 = vadd.f32 %v1640_v20, %v1370_v41  ;;  %v1680_v61 = vpop.permute.xlu0 %1679 }
 0x4ff   :  { %v1601_v23 = vpop.f32.mrf.mxu0  ;;  %v1642_v24 = vpop.f32.mrf.mxu1  ;;  %vm1681_vm13 = vcmp.eq.s32.totalorder %v1680_v61, 1 }
 0x500   :  { %v2977_v25 = vmul.f32 -1.442695, %v1647_v22  ;;  %v1648_v26 = vadd.f32 %v1601_v23, %v1369_v21  ;;  %v1650_v36 = vadd.f32 %v1642_v24, %v1371_v35 }
 0x501   :  { %v1603_v28 = vpop.f32.mrf.mxu0  ;;  %v1644_v29 = vpop.f32.mrf.mxu1 }
 0x502   :  { %3319 = vpow2.f32 %v2977_v25  ;;  %v2978_v30 = vmul.f32 -1.442695, %v1648_v26  ;;  %v2979_v44 = vmul.f32 -1.442695, %v1650_v36  ;;  %v1691_v29 = vld [vmem:[#allocation5 + $0xa8] sm:$0xff] }
 0x503   :  { %v1604_v32 = vpop.f32.mrf.mxu0  ;;  %v1645_v33 = vpop.f32.mrf.mxu1 }
 0x504   :  { %3321 = vpow2.f32 %v2978_v30 }
 0x505   :  { %3323 = vpow2.f32 %v2979_v44 }
 0x50f   :  { %v3320_v58 = vpop.eup %3319 }
 0x510   :  { %v1654_v60 = vadd.f32 1.0, %v3320_v58 }
 0x511   :  { %v3322_v27 = vpop.eup %3321 }
 0x512   :  { %3325 = vrcp.f32 %v1654_v60  ;;  %v1660_v11 = vadd.f32 1.0, %v3322_v27  ;;  %v3324_v12 = vpop.eup %3323  ;;  %v1693_v27 = vld [vmem:[#allocation5 + $0xb8] sm:$0xff] }
 0x513   :  { %3327 = vtanh.f32 %v1649_v59  ;;  %v1667_v17 = vadd.f32 1.0, %v3324_v12 }
 0x514   :  { %3329 = vrcp.f32 %v1660_v11  ;;  %v1692_v11 = vld [vmem:[#allocation5 + $0xb0] sm:$0xff] }
 0x515   :  { %3331 = vrcp.f32 %v1667_v17 }
 0x51f   :  { %v3326_v14 = vpop.eup %3325 }
 0x520   :  { %v3328_v15 = vpop.eup %3327 }
 0x521   :  { %v3330_v16 = vpop.eup %3329  ;;  %v1671_v19 = vmul.f32 %v3328_v15, %v3326_v14 }
 0x522   :  { %v1670_v57 = vmul.f32 %v3330_v16, %v3875_v13  ;;  %v3332_v22 = vpop.eup %3331 }
 0x524   :  { %v1672_v21 = vadd.f32 %v1671_v19, %v1670_v57 }
 0x526   :  { %3333 = vtanh.f32 %v1672_v21  ;;  %v3918_v20 = vsel %vm1681_vm13, %v1672_v21, %v3875_v13  ;;  %v1690_v13 = vld [vmem:[#allocation5 + $0xa0] sm:$0xff] }
 0x533   :  { %v3334_v23 = vpop.eup %3333 }
 0x534   :  { %v1674_v24 = vmul.f32 %v3334_v23, %v3332_v22 }
 0x536   :  { %v3921_v25 = vsel %vm1681_vm13, %v1674_v24, %v3878_v18 }
 0x537   :  { %v1694_v26 = vpack.c.bf16 %v3921_v25, %v3921_v25 }
 0x539   :  { %1920 = vmatmul.mubr.bf16.vlgmr.msra.gmra.mxu0 %v1694_v26  ;;  %1961 = vmatmul.mubr.bf16.vlgmr.msra.gmra.mxu1 %v1694_v26  ;;  %v2002_v26 = vpop.permute.xlu1 %2001 }
 0x53a   :  { %2210 = vmatpush1.bf16.msra.mxu0 %v3779_v0  ;;  %2251 = vmatpush1.bf16.msra.mxu1 %v3781_v31  ;;  %vm2003_vm14 = vcmp.eq.s32.totalorder %v2002_v26, 1 }
 0x53b   :  { %2211 = vmatprep.subr.bf16.mxu0 %v3787_v34  ;;  %2252 = vmatprep.subr.bf16.mxu1 %v3789_v37 }
 0x53c   :  { %2241 = vmatprep.mubr.bf16.mxu0 %v3460_v1  ;;  %2282 = vmatprep.mubr.bf16.mxu1 %v3460_v1 }
 0x53e   :  { %2212 = vmatpush1.bf16.msra.mxu0 %v3791_v38  ;;  %2253 = vmatpush1.bf16.msra.mxu1 %v3793_v39 }
 0x53f   :  { %2213 = vmatprep.subr.bf16.mxu0 %v3799_v42  ;;  %2254 = vmatprep.subr.bf16.mxu1 %v3801_v43 }
 0x542   :  { %2214 = vmatpush1.bf16.msra.mxu0 %v3803_v45  ;;  %2255 = vmatpush1.bf16.msra.mxu1 %v3805_v46 }
 0x543   :  { %2215 = vmatprep.subr.bf16.mxu0 %v3811_v47  ;;  %2256 = vmatprep.subr.bf16.mxu1 %v3813_v48 }
 0x546   :  { %2216 = vmatpush1.bf16.msra.mxu0 %v3815_v2  ;;  %2257 = vmatpush1.bf16.msra.mxu1 %v3817_v7 }
 0x547   :  { %2217 = vmatprep.subr.bf16.mxu0 %v3821_v49  ;;  %2258 = vmatprep.subr.bf16.mxu1 %v3829_v52 }
 0x54a   :  { %2218 = vmatpush1.bf16.msra.mxu0 %v3825_v50  ;;  %2259 = vmatpush1.bf16.msra.mxu1 %v3827_v51 }
 0x54b   :  { %2219 = vmatprep.subr.bf16.mxu0 %v3832_v53  ;;  %2260 = vmatprep.subr.bf16.mxu1 %v3834_v54 }
 0x54e   :  { %2220 = vmatpush1.bf16.msra.mxu0 %v3839_v55  ;;  %2261 = vmatpush1.bf16.msra.mxu1 %v3841_v56 }
 0x54f   :  { %2221 = vmatprep.subr.bf16.mxu0 %v3845_v40  ;;  %2262 = vmatprep.subr.bf16.mxu1 %v3847_v3 }
 0x552   :  { %2222 = vmatpush1.bf16.msra.mxu0 %v3851_v4  ;;  %2263 = vmatpush1.bf16.msra.mxu1 %v3853_v5 }
 0x553   :  { %2223 = vmatprep.subr.bf16.mxu0 %v3857_v6  ;;  %2264 = vmatprep.subr.bf16.mxu1 %v3859_v8 }
 0x556   :  { %2224 = vmatpush1.bf16.msra.mxu0 %v3863_v9  ;;  %2265 = vmatpush1.bf16.msra.mxu1 %v3865_v10 }
 0x557   :  { %2531 = vmatprep.subr.bf16.mxu0 %v3775_v62  ;;  %2572 = vmatprep.subr.bf16.mxu1 %v3777_v63 }
 0x5f9   :  { %v1921_v18 = vpop.f32.mrf.mxu0  ;;  %v1962_v28 = vpop.f32.mrf.mxu1 }
 0x5fa   :  { %v1969_v30 = vadd.f32 %v1921_v18, %v1690_v13  ;;  %v1971_v14 = vadd.f32 %v1962_v28, %v1692_v11  ;;  %v3250_v11 = vld [vmem:[#allocation9 + $0x20] sm:$0xff]  }
 0x5fb   :  { %v1923_v32 = vpop.f32.mrf.mxu0  ;;  %v1964_v33 = vpop.f32.mrf.mxu1 }
 0x5fc   :  { %v3013_v35 = vmul.f32 -1.442695, %v1969_v30  ;;  %v1970_v36 = vadd.f32 %v1923_v32, %v1691_v29  ;;  %v1972_v62 = vadd.f32 %v1964_v33, %v1693_v27  ;;  %v3248_v27 = vld [vmem:[#allocation9 + $0x30] sm:$0xff]  }
 0x5fd   :  { %v1925_v41 = vpop.f32.mrf.mxu0  ;;  %v1966_v44 = vpop.f32.mrf.mxu1 }
 0x5fe   :  { %3335 = vpow2.f32 %v3013_v35  ;;  %v3014_v58 = vmul.f32 -1.442695, %v1970_v36  ;;  %v3015_v63 = vmul.f32 -1.442695, %v1972_v62  ;;  %v3249_v62 = vld [vmem:[#allocation9 + $0x28] sm:$0xff]  }
 0x5ff   :  { %v1926_v59 = vpop.f32.mrf.mxu0  ;;  %v1967_v60 = vpop.f32.mrf.mxu1 }
 0x600   :  { %3337 = vpow2.f32 %v3014_v58  ;;  %v3247_v59 = vld [vmem:[#allocation9 + $0x38] sm:$0xff]   ;;  %v3462_v60 = vmov 0.0  }
 0x601   :  { %3339 = vpow2.f32 %v3015_v63  ;;  %v3251_v63 = vld [vmem:[#allocation9 + $0x18] sm:$0xff]  }
 0x60b   :  { %v3336_v12 = vpop.eup %3335 }
 0x60c   :  { %v1976_v15 = vadd.f32 1.0, %v3336_v12  ;;  %v3252_v12 = vld [vmem:[#allocation9 + $0x10] sm:$0xff]  }
 0x60d   :  { %v3338_v16 = vpop.eup %3337 }
 0x60e   :  { %3341 = vrcp.f32 %v1976_v15  ;;  %v1982_v17 = vadd.f32 1.0, %v3338_v16  ;;  %v3340_v19 = vpop.eup %3339  ;;  %v3254_v15 = vld [vmem:[#allocation9] sm:$0xff]  }
 0x60f   :  { %3343 = vtanh.f32 %v1971_v14  ;;  %v1989_v22 = vadd.f32 1.0, %v3340_v19  ;;  %v3253_v14 = vld [vmem:[#allocation9 + $0x8] sm:$0xff]   ;;  %v2334_v16 = vld [vmem:[#allocation5 + $0xe0] sm:$0xff] }
 0x610   :  { %3345 = vrcp.f32 %v1982_v17 }
 0x611   :  { %3347 = vrcp.f32 %v1989_v22 }
 0x61b   :  { %v3342_v57 = vpop.eup %3341 }
 0x61c   :  { %v3344_v61 = vpop.eup %3343 }
 0x61d   :  { %v3346_v21 = vpop.eup %3345  ;;  %v1993_v23 = vmul.f32 %v3344_v61, %v3342_v57  ;;  %v2335_v57 = vld [vmem:[#allocation5 + $0xe8] sm:$0xff] }
 0x61e   :  { %v1992_v24 = vmul.f32 %v3346_v21, %v3918_v20  ;;  %v3348_v28 = vpop.eup %3347 }
 0x620   :  { %v1994_v13 = vadd.f32 %v1993_v23, %v1992_v24 }
 0x622   :  { %3349 = vtanh.f32 %v1994_v13  ;;  %v3961_v18 = vsel %vm2003_vm14, %v1994_v13, %v3918_v20 }
 0x62f   :  { %v3350_v29 = vpop.eup %3349 }
 0x630   :  { %v1996_v30 = vmul.f32 %v3350_v29, %v3348_v28 }
 0x632   :  { %v3964_v32 = vsel %vm2003_vm14, %v1996_v30, %v3921_v25  ;;  %v2337_v30 = vld [vmem:[#allocation5 + $0xf8] sm:$0xff] }
 0x633   :  { %v2016_v33 = vpack.c.bf16 %v3964_v32, %v3964_v32 }
 0x635   :  { %2242 = vmatmul.mubr.bf16.vlgmr.msra.gmra.mxu0 %v2016_v33  ;;  %2283 = vmatmul.mubr.bf16.vlgmr.msra.gmra.mxu1 %v2016_v33  ;;  %v2336_v33 = vld [vmem:[#allocation5 + $0xf0] sm:$0xff] }
 0x636   :  { %2532 = vmatpush1.bf16.msra.mxu0 %v3779_v0  ;;  %2573 = vmatpush1.bf16.msra.mxu1 %v3781_v31 }
 0x637   :  { %2533 = vmatprep.subr.bf16.mxu0 %v3787_v34  ;;  %2574 = vmatprep.subr.bf16.mxu1 %v3789_v37  ;;  %v2013_v34 = vld [vmem:[#allocation5 + $0xc8] sm:$0xff] }
 0x638   :  { %2563 = vmatprep.mubr.bf16.mxu0 %v3460_v1  ;;  %2604 = vmatprep.mubr.bf16.mxu1 %v3460_v1  ;;  %v2012_v1 = vld [vmem:[#allocation5 + $0xc0] sm:$0xff] }
 0x63a   :  { %2534 = vmatpush1.bf16.msra.mxu0 %v3791_v38  ;;  %2575 = vmatpush1.bf16.msra.mxu1 %v3793_v39 }
 0x63b   :  { %2535 = vmatprep.subr.bf16.mxu0 %v3799_v42  ;;  %2576 = vmatprep.subr.bf16.mxu1 %v3801_v43 }
 0x63e   :  { %2536 = vmatpush1.bf16.msra.mxu0 %v3803_v45  ;;  %2577 = vmatpush1.bf16.msra.mxu1 %v3805_v46 }
 0x63f   :  { %2537 = vmatprep.subr.bf16.mxu0 %v3811_v47  ;;  %2578 = vmatprep.subr.bf16.mxu1 %v3813_v48 }
 0x642   :  { %2538 = vmatpush1.bf16.msra.mxu0 %v3815_v2  ;;  %2579 = vmatpush1.bf16.msra.mxu1 %v3817_v7  ;;  %v2015_v7 = vld [vmem:[#allocation5 + $0xd8] sm:$0xff] }
 0x643   :  { %2539 = vmatprep.subr.bf16.mxu0 %v3821_v49  ;;  %2580 = vmatprep.subr.bf16.mxu1 %v3829_v52 }
 0x646   :  { %2540 = vmatpush1.bf16.msra.mxu0 %v3825_v50  ;;  %2581 = vmatpush1.bf16.msra.mxu1 %v3827_v51  ;;  %v2014_v50 = vld [vmem:[#allocation5 + $0xd0] sm:$0xff] }
 0x647   :  { %2541 = vmatprep.subr.bf16.mxu0 %v3832_v53  ;;  %2582 = vmatprep.subr.bf16.mxu1 %v3834_v54 }
 0x64a   :  { %2542 = vmatpush1.bf16.msra.mxu0 %v3839_v55  ;;  %2583 = vmatpush1.bf16.msra.mxu1 %v3841_v56 }
 0x64b   :  { %2543 = vmatprep.subr.bf16.mxu0 %v3845_v40  ;;  %2584 = vmatprep.subr.bf16.mxu1 %v3847_v3 }
 0x64e   :  { %2544 = vmatpush1.bf16.msra.mxu0 %v3851_v4  ;;  %2585 = vmatpush1.bf16.msra.mxu1 %v3853_v5 }
 0x64f   :  { %2545 = vmatprep.subr.bf16.mxu0 %v3857_v6  ;;  %2586 = vmatprep.subr.bf16.mxu1 %v3859_v8  ;;  %v2324_v8 = vpop.permute.xlu0 %2323 }
 0x650   :  { %vm2325_vm15 = vcmp.eq.s32.totalorder %v2324_v8, 1 }
 0x652   :  { %2546 = vmatpush1.bf16.msra.mxu0 %v3863_v9  ;;  %2587 = vmatpush1.bf16.msra.mxu1 %v3865_v10 }
 0x653   :  { %3116 = vmatprep.subr.bf16.mxu0 %v3462_v60 }
 0x6f5   :  { %v2243_v0 = vpop.f32.mrf.mxu0  ;;  %v2284_v31 = vpop.f32.mrf.mxu1 }
 0x6f6   :  { %v2291_v37 = vadd.f32 %v2243_v0, %v2012_v1  ;;  %v2293_v53 = vadd.f32 %v2284_v31, %v2014_v50 }
 0x6f7   :  { %v2245_v38 = vpop.f32.mrf.mxu0  ;;  %v2286_v39 = vpop.f32.mrf.mxu1 }
 0x6f8   :  { %v3049_v42 = vmul.f32 -1.442695, %v2291_v37  ;;  %v2292_v43 = vadd.f32 %v2245_v38, %v2013_v34  ;;  %v2294_v49 = vadd.f32 %v2286_v39, %v2015_v7 }
 0x6f9   :  { %v2247_v45 = vpop.f32.mrf.mxu0  ;;  %v2288_v46 = vpop.f32.mrf.mxu1 }
 0x6fa   :  { %3351 = vpow2.f32 %v3049_v42  ;;  %v3050_v47 = vmul.f32 -1.442695, %v2292_v43  ;;  %v3051_v51 = vmul.f32 -1.442695, %v2294_v49  ;;  %v2646_v49 = vpop.permute.xlu1 %2645 }
 0x6fb   :  { %v2248_v48 = vpop.f32.mrf.mxu0  ;;  %v2289_v2 = vpop.f32.mrf.mxu1  ;;  %vm2647_vm1 = vcmp.eq.s32.totalorder %v2646_v49, 1 }
 0x6fc   :  { %3353 = vpow2.f32 %v3050_v47 }
 0x6fd   :  { %3355 = vpow2.f32 %v3051_v51 }
 0x707   :  { %v3352_v52 = vpop.eup %3351 }
 0x708   :  { %v2298_v54 = vadd.f32 1.0, %v3352_v52 }
 0x709   :  { %v3354_v55 = vpop.eup %3353 }
 0x70a   :  { %3357 = vrcp.f32 %v2298_v54  ;;  %v2304_v56 = vadd.f32 1.0, %v3354_v55  ;;  %v3356_v40 = vpop.eup %3355  ;;  %v3089_v54 = vld [vmem:[%s4024_s4] ss:$0 sm:$0xff] }
 0x70b   :  { %3359 = vtanh.f32 %v2293_v53  ;;  %v2311_v6 = vadd.f32 1.0, %v3356_v40 }
 0x70c   :  { %3361 = vrcp.f32 %v2304_v56 }
 0x70d   :  { %3363 = vrcp.f32 %v2311_v6 }
 0x717   :  { %v3358_v3 = vpop.eup %3357 }
 0x718   :  { %v3360_v4 = vpop.eup %3359 }
 0x719   :  { %v3362_v5 = vpop.eup %3361  ;;  %v2315_v9 = vmul.f32 %v3360_v4, %v3358_v3  ;;  %v3098_v3 = vld [vmem:[%s4025_s5] ss:$0 sm:$0xff] }
 0x71a   :  { %v2314_v10 = vmul.f32 %v3362_v5, %v3961_v18  ;;  %v3364_v35 = vpop.eup %3363 }
 0x71c   :  { %v2316_v20 = vadd.f32 %v2315_v9, %v2314_v10  ;;  %v3099_v9 = vld [vmem:[#allocation4] ss:$0 sm:$0xff] }
 0x71e   :  { %3365 = vtanh.f32 %v2316_v20  ;;  %v4002_v25 = vsel %vm2325_vm15, %v2316_v20, %v3961_v18 }
 0x72b   :  { %v3366_v36 = vpop.eup %3365 }
 0x72c   :  { %v2318_v41 = vmul.f32 %v3366_v36, %v3364_v35 }
 0x72e   :  { %v4005_v44 = vsel %vm2325_vm15, %v2318_v41, %v3964_v32 }
 0x72f   :  { %v2338_v58 = vpack.c.bf16 %v4005_v44, %v4005_v44 }
 0x731   :  { %2564 = vmatmul.mubr.bf16.vlgmr.msra.gmra.mxu0 %v2338_v58  ;;  %2605 = vmatmul.mubr.bf16.vlgmr.msra.gmra.mxu1 %v2338_v58 }
 0x732   :  { %3117 = vmatpush3.bf16.msra.mxu0 %v3247_v59  ;;  %3132 = vmatprep.mubr.msk.bf16.mxu0 %vm3463_vm0, %v3462_v60 }
 0x733   :  { %3118 = vmatprep.subr.bf16.mxu0 %v3462_v60 }
 0x736   :  { %3119 = vmatpush3.bf16.msra.mxu0 %v3248_v27 }
 0x737   :  { %3120 = vmatprep.subr.bf16.mxu0 %v3462_v60 }
 0x73a   :  { %3121 = vmatpush3.bf16.msra.mxu0 %v3249_v62 }
 0x73b   :  { %3122 = vmatprep.subr.bf16.mxu0 %v3462_v60 }
 0x73e   :  { %3123 = vmatpush3.bf16.msra.mxu0 %v3250_v11 }
 0x73f   :  { %3124 = vmatprep.subr.bf16.mxu0 %v3462_v60 }
 0x742   :  { %3125 = vmatpush3.bf16.msra.mxu0 %v3251_v63 }
 0x743   :  { %3126 = vmatprep.subr.bf16.mxu0 %v3462_v60 }
 0x746   :  { %3127 = vmatpush3.bf16.msra.mxu0 %v3252_v12 }
 0x747   :  { %3128 = vmatprep.subr.bf16.mxu0 %v3462_v60 }
 0x74a   :  { %3129 = vmatpush3.bf16.msra.mxu0 %v3253_v14 }
 0x74b   :  { %3130 = vmatprep.subr.bf16.mxu0 %v3462_v60 }
 0x74e   :  { %3131 = vmatpush3.bf16.msra.mxu0 %v3254_v15 }
 0x7f1   :  { %v2565_v17 = vpop.f32.mrf.mxu0  ;;  %v2606_v19 = vpop.f32.mrf.mxu1 }
 0x7f2   :  { %v2613_v61 = vadd.f32 %v2565_v17, %v2334_v16  ;;  %v2615_v31 = vadd.f32 %v2606_v19, %v2336_v33 }
 0x7f3   :  { %v2567_v21 = vpop.f32.mrf.mxu0  ;;  %v2608_v22 = vpop.f32.mrf.mxu1 }
 0x7f4   :  { %v3085_v23 = vmul.f32 -1.442695, %v2613_v61  ;;  %v2614_v24 = vadd.f32 %v2567_v21, %v2335_v57  ;;  %v2616_v32 = vadd.f32 %v2608_v22, %v2337_v30 }
 0x7f5   :  { %v2569_v26 = vpop.f32.mrf.mxu0  ;;  %v2610_v13 = vpop.f32.mrf.mxu1 }
 0x7f6   :  { %3367 = vpow2.f32 %v3085_v23  ;;  %v3086_v18 = vmul.f32 -1.442695, %v2614_v24  ;;  %v3087_v1 = vmul.f32 -1.442695, %v2616_v32 }
 0x7f7   :  { %v2570_v28 = vpop.f32.mrf.mxu0  ;;  %v2611_v29 = vpop.f32.mrf.mxu1 }
 0x7f8   :  { %3369 = vpow2.f32 %v3086_v18 }
 0x7f9   :  { %3371 = vpow2.f32 %v3087_v1 }
 0x803   :  { %v3368_v0 = vpop.eup %3367 }
 0x804   :  { %v2620_v34 = vadd.f32 1.0, %v3368_v0 }
 0x805   :  { %v3370_v37 = vpop.eup %3369 }
 0x806   :  { %3373 = vrcp.f32 %v2620_v34  ;;  %v2626_v38 = vadd.f32 1.0, %v3370_v37  ;;  %v3372_v39 = vpop.eup %3371 }
 0x807   :  { %3375 = vtanh.f32 %v2615_v31  ;;  %v2633_v46 = vadd.f32 1.0, %v3372_v39 }
 0x808   :  { %3377 = vrcp.f32 %v2626_v38 }
 0x809   :  { %3379 = vrcp.f32 %v2633_v46 }
 0x813   :  { %v3374_v42 = vpop.eup %3373 }
 0x814   :  { %v3376_v43 = vpop.eup %3375 }
 0x815   :  { %v3378_v45 = vpop.eup %3377  ;;  %v2637_v47 = vmul.f32 %v3376_v43, %v3374_v42 }
 0x816   :  { %v2636_v48 = vmul.f32 %v3378_v45, %v4002_v25  ;;  %v3380_v7 = vpop.eup %3379 }
 0x818   :  { %v2638_v2 = vadd.f32 %v2637_v47, %v2636_v48 }
 0x81a   :  { %3381 = vtanh.f32 %v2638_v2 }
 0x827   :  { %v3382_v50 = vpop.eup %3381 }
 0x828   :  { %v2640_v51 = vmul.f32 %v3382_v50, %v3380_v7 }
 0x82a   :  { %v2648_v52 = vsel %vm2647_vm1, %v2640_v51, %v4005_v44 }
 0x82b   :  { %v2656_v53 = vpack.c.bf16 %v2648_v52, %v2648_v52 }
 0x82d   :  { %3133 = vmatmul.mubr.bf16.vlgmr.msra.gmra.mxu0 %v2656_v53 }
 0x8ed   :  { %v2762_v55 = vpop.f32.mrf.mxu0 }
 0x8ee   :  { %v2763_v56 = vadd.f32 %v3089_v54, %v2762_v55 }
 0x8ef   :  { %v3134_v40 = vpop.f32.mrf.mxu0 }
 0x8f0   :  { %v2768_v4 = vmax.f32 %v2763_v56, 0.0 }
 0x8f1   :  { %v2765_v5 = vpop.f32.mrf.mxu0 }
 0x8f2   :  { %v2776_v6 = vmul.f32 %v3098_v3, %v2768_v4 }
 0x8f3   :  { %v3135_v8 = vpop.f32.mrf.mxu0 }
 0x8f4   :  { %2777 = vadd.xlane.f32.xlu0 %v2776_v6 }
 0x97d   :  { %v2778_v10 = vpop.xlane.xlu0 %2777 }
 0x97e   :  { %v2786_v20 = vadd.f32 %v3099_v9, %v2778_v10 }
 0x980   :  { %v3100_v25 = vmul.f32 -1.442695, %v2786_v20 }
 0x982   :  { %3383 = vpow2.f32 %v3100_v25 }
 0x98f   :  { %v3384_v35 = vpop.eup %3383 }
 0x990   :  { %v2790_v36 = vadd.f32 1.0, %v3384_v35 }
 0x992   :  { %3385 = vrcp.f32 %v2790_v36 }
 0x99f   :  { %v3386_v41 = vpop.eup %3385 }
 0x9a0   :  { %2794 = vst.msk [vmem:[%s4027_s7] sm:$0xff] %vm2793_vm2, %v3386_v41 }
 0x9a1   :  { %2799 = vsyncpa [#allocation6], 1 }
 0x9a2   :  { %2800 = vsyncpa [#allocation8], 1 }

</bundles_post_ra>
